<compile_context>
chip_gen: v5e
topology: v5e:2x2
jax: 0.10.0
libtpu: 0.0.40
codegen_flags: <defaults>
</compile_context>

<pallas_src>
import math
import functools

import jax
import jax.numpy as jnp
from jax.experimental import pallas as pl
from jax.experimental.pallas import tpu as pltpu

# ---------------- config (small, consistent with the module) ----------------
B = 2            # batch
S = 8            # sequence length
D = 32           # n_units (hidden size)
H = 4            # attention heads
DH = D // H      # head dim
F = 64           # FFN inner dim
V = 64           # vocab_size
VP = 128         # vocab padded to full 128-lane width (lane-dense output stores)
L = 2            # number of transformer layers
EPS = 1e-5       # LayerNorm eps (PyTorch default)
NEG = -1e9       # additive-mask / pad-logit value

# ---- packed-slab layout (everything lane-padded to 128, row offsets multiples of 8) ----
OFF_WQKV = 0     # (D, 3D) at cols [0:96]   (Wq | Wk | Wv)
OFF_WO = 32      # (D, D)  at cols [0:32]
OFF_W1 = 64      # (D, F)  at cols [0:64]
OFF_W2 = 96      # (F, D)  at cols [0:32]
RW = 160         # W-slab rows per layer
W_ROWS = L * RW + D          # + output projection (D, VP)
RV = 8           # vector-slab rows per layer: bqkv, bo, b1, b2, g1, beta1, g2, beta2
V_ROWS = 24      # L*RV + 1 output-bias row, padded up to a multiple of 8


def _layer_norm(x, g, b):
    # one-pass: two independent lane reductions, var = E[x^2] - E[x]^2
    m1 = jnp.mean(x, axis=-1, keepdims=True)
    m2 = jnp.mean(x * x, axis=-1, keepdims=True)
    var = m2 - m1 * m1
    return (x - m1) * jax.lax.rsqrt(var + EPS) * g + b


def transformer_kernel(x_ref, mask_ref, w_ref, v_ref, out_ref):
    # Whole batch in one program: flatten (B, S, D) -> (B*S, D) for all dense layers.
    x2 = x_ref[...].reshape(B * S, D)                       # (16, 32) f32
    # additive mask built in-kernel: mask==1 -> 0 (attend), mask==0 -> -1e9 (masked)
    mask_add = (mask_ref[...] - 1.0) * jnp.float32(-NEG)    # (B, S, S)
    scale = 1.0 / math.sqrt(DH)

    for l in range(L):                                      # static python loop over layers
        wr = l * RW
        vr = l * RV

        # ---- multi-head self-attention sublayer (post-LN + residual) ----
        # fused QKV projection: one (16,32)x(32,128) MXU push (cols 96:128 of W are zero)
        wqkv = w_ref[wr + OFF_WQKV:wr + OFF_WQKV + D, :]                     # (32, 128)
        bqkv = v_ref[vr + 0:vr + 1, :]                                       # (1, 128)
        qkvf = jnp.dot(x2, wqkv, preferred_element_type=jnp.float32) + bqkv  # (16, 128)
        qkv3 = qkvf.reshape(B, S, 4 * D)                                     # (2, 8, 128)

        ctx = []
        for h in range(H):                 # static loop over heads; batched 3-D einsums over B
            qh = qkv3[:, :, h * DH:(h + 1) * DH]                             # (B, S, DH)
            kh = qkv3[:, :, D + h * DH:D + (h + 1) * DH]
            vh = qkv3[:, :, 2 * D + h * DH:2 * D + (h + 1) * DH]
            s = jnp.einsum('bqd,bkd->bqk', qh, kh,
                           preferred_element_type=jnp.float32) * scale       # (B, S, S)
            s = s + mask_add
            s = s - jnp.max(s, axis=-1, keepdims=True)
            p = jnp.exp(s)
            p = p * pl.reciprocal(jnp.sum(p, axis=-1, keepdims=True), approx=True)
            ctx.append(jnp.einsum('bqk,bkd->bqd', p, vh,
                                  preferred_element_type=jnp.float32))       # (B, S, DH)

        # fused output projection: contiguous context -> one (16,32)x(32,32) matmul
        ctx_all = jnp.concatenate(ctx, axis=-1).reshape(B * S, D)            # (16, 32)
        wo = w_ref[wr + OFF_WO:wr + OFF_WO + D, 0:D]                         # (32, 32)
        bo = v_ref[vr + 1:vr + 2, 0:D]                                       # (1, 32)
        attn = jnp.dot(ctx_all, wo, preferred_element_type=jnp.float32) + bo

        g1 = v_ref[vr + 4:vr + 5, 0:D]
        be1 = v_ref[vr + 5:vr + 6, 0:D]
        x2 = _layer_norm(x2 + attn, g1, be1)                 # post-LN (PyTorch default)

        # ---- feed-forward sublayer (post-LN + residual) ----
        w1 = w_ref[wr + OFF_W1:wr + OFF_W1 + D, 0:F]                          # (32, 64)
        b1 = v_ref[vr + 2:vr + 3, 0:F]
        w2 = w_ref[wr + OFF_W2:wr + OFF_W2 + F, 0:D]                          # (64, 32)
        b2 = v_ref[vr + 3:vr + 4, 0:D]
        hdn = jnp.maximum(jnp.dot(x2, w1, preferred_element_type=jnp.float32) + b1, 0.0)
        ffn = jnp.dot(hdn, w2, preferred_element_type=jnp.float32) + b2

        g2 = v_ref[vr + 6:vr + 7, 0:D]
        be2 = v_ref[vr + 7:vr + 8, 0:D]
        x2 = _layer_norm(x2 + ffn, g2, be2)

    # ---- output_layer (Linear(n_units, vocab_size)) + log_softmax(dim=-1) ----
    # vocab padded to VP=128 lanes; padded columns get bias -1e9 -> contribute 0 to the LSE,
    # so log_softmax over the real V columns is exact (padding sliced off in the wrapper).
    wout = w_ref[L * RW:L * RW + D, :]                                        # (32, 128)
    bout = v_ref[L * RV:L * RV + 1, :]                                        # (1, 128)
    logits = jnp.dot(x2, wout, preferred_element_type=jnp.float32) + bout     # (16, 128)
    lmax = jnp.max(logits, axis=-1, keepdims=True)
    lse = jnp.log(jnp.sum(jnp.exp(logits - lmax), axis=-1, keepdims=True)) + lmax
    out_ref[...] = logits - lse                              # lane-dense (B*S, 128) store


def full_transformer_forward(emb, mask, w_slab, v_slab):
    """emb: (B,S,D) f32, mask: (B,S,S) f32 (1 = attend) -> (B,S,V) log-probs."""
    out_p = pl.pallas_call(
        transformer_kernel,
        out_shape=jax.ShapeDtypeStruct((B * S, VP), jnp.float32),
        in_specs=[pl.BlockSpec(memory_space=pltpu.MemorySpace.VMEM)] * 4,
        out_specs=pl.BlockSpec(memory_space=pltpu.MemorySpace.VMEM),
    )(emb, mask, w_slab, v_slab)
    # lane-padding drop + (B,S,·) reshape kept out of the kernel (keeps stores unmasked)
    return out_p.reshape(B, S, VP)[:, :, :V]


def init_params(key):
    """Build the embedding table plus the two packed, lane-dense parameter slabs."""
    ks = jax.random.split(key, 5)
    scale = 0.02
    emb_table = jax.random.normal(ks[0], (V, D), jnp.float32) * scale
    w_attn = jax.random.normal(ks[1], (L, 4, D, D), jnp.float32) * scale     # q, k, v, o
    w1 = jax.random.normal(ks[2], (L, D, F), jnp.float32) * scale
    w2 = jax.random.normal(ks[3], (L, F, D), jnp.float32) * scale
    wout = jax.random.normal(ks[4], (D, V), jnp.float32) * scale

    w_slab = jnp.zeros((W_ROWS, VP), jnp.float32)
    v_slab = jnp.zeros((V_ROWS, VP), jnp.float32)
    for l in range(L):
        base = l * RW
        w_slab = w_slab.at[base + OFF_WQKV:base + OFF_WQKV + D, 0:D].set(w_attn[l, 0])
        w_slab = w_slab.at[base + OFF_WQKV:base + OFF_WQKV + D, D:2 * D].set(w_attn[l, 1])
        w_slab = w_slab.at[base + OFF_WQKV:base + OFF_WQKV + D, 2 * D:3 * D].set(w_attn[l, 2])
        w_slab = w_slab.at[base + OFF_WO:base + OFF_WO + D, 0:D].set(w_attn[l, 3])
        w_slab = w_slab.at[base + OFF_W1:base + OFF_W1 + D, 0:F].set(w1[l])
        w_slab = w_slab.at[base + OFF_W2:base + OFF_W2 + F, 0:D].set(w2[l])
        vb = l * RV
        # biases (rows vb+0..vb+3) left at zero; LayerNorm gammas = 1, betas = 0
        v_slab = v_slab.at[vb + 4, 0:D].set(1.0)   # gamma1
        v_slab = v_slab.at[vb + 6, 0:D].set(1.0)   # gamma2
    # output projection + lane-padded output bias (-1e9 on padded vocab columns)
    w_slab = w_slab.at[L * RW:L * RW + D, 0:V].set(wout)
    v_slab = v_slab.at[L * RV, :].set(NEG)
    v_slab = v_slab.at[L * RV, 0:V].set(0.0)
    return emb_table, w_slab, v_slab


def sinusoidal_positions(seq_len, d_model):
    pos = jnp.arange(seq_len, dtype=jnp.float32)[:, None]
    i = jnp.arange(d_model // 2, dtype=jnp.float32)[None, :]
    angle = pos / jnp.power(10000.0, (2.0 * i) / d_model)
    pe = jnp.zeros((seq_len, d_model), jnp.float32)
    pe = pe.at[:, 0::2].set(jnp.sin(angle))
    pe = pe.at[:, 1::2].set(jnp.cos(angle))
    return pe


if __name__ == "__main__":
    key = jax.random.PRNGKey(0)
    k_tok, k_par = jax.random.split(key)
    emb_table, w_slab, v_slab = init_params(k_par)

    # deterministic example inputs
    input_sequence = jax.random.randint(k_tok, (B, S), 0, V, dtype=jnp.int32)
    mask = jnp.broadcast_to(jnp.tril(jnp.ones((S, S), jnp.float32)), (B, S, S))

    # embedding(input_sequence): scaled lookup + sinusoidal positions (glue, plain JAX)
    emb = emb_table[input_sequence] * jnp.float32(math.sqrt(D))
    emb = emb + sinusoidal_positions(S, D)[None, :, :]

    fwd = jax.jit(full_transformer_forward)
    log_probs = fwd(emb, mask, w_slab, v_slab)
    jax.block_until_ready(log_probs)

    assert log_probs.shape == (B, S, V)
    # sanity: rows of log_softmax should exp-sum to ~1
    assert bool(jnp.allclose(jnp.exp(log_probs).sum(-1), 1.0, atol=1e-4))
    print("KERNEL_OK")
</pallas_src>

<mosaic_0001>
module attributes {stable_mosaic.version = 11 : i64} {
  func.func @transformer_kernel(%arg0: memref<2x8x32xf32, #tpu.memory_space<vmem>>, %arg1: memref<2x8x8xf32, #tpu.memory_space<vmem>>, %arg2: memref<352x128xf32, #tpu.memory_space<vmem>>, %arg3: memref<24x128xf32, #tpu.memory_space<vmem>>, %arg4: memref<16x128xf32, #tpu.memory_space<vmem>>) attributes {dimension_semantics = [], scalar_prefetch = 0 : i64, scratch_operands = 0 : i64, tpu.core_type = #tpu.core_type<tc>} {
    %c0 = arith.constant 0 : index
    %c0_0 = arith.constant 0 : index
    %c0_1 = arith.constant 0 : index
    %0 = vector.load %arg0[%c0, %c0_0, %c0_1] : memref<2x8x32xf32, #tpu.memory_space<vmem>>, vector<2x8x32xf32>
    %1 = vector.shape_cast %0 : vector<2x8x32xf32> to vector<16x32xf32>
    %c0_2 = arith.constant 0 : index
    %c0_3 = arith.constant 0 : index
    %c0_4 = arith.constant 0 : index
    %2 = vector.load %arg1[%c0_2, %c0_3, %c0_4] : memref<2x8x8xf32, #tpu.memory_space<vmem>>, vector<2x8x8xf32>
    %cst = arith.constant 1.000000e+00 : f32
    %3 = vector.broadcast %cst : f32 to vector<2x8x8xf32>
    %4 = arith.subf %2, %3 : vector<2x8x8xf32>
    %cst_5 = arith.constant 1.000000e+09 : f32
    %5 = vector.broadcast %cst_5 : f32 to vector<2x8x8xf32>
    %6 = arith.mulf %4, %5 : vector<2x8x8xf32>
    %c0_6 = arith.constant 0 : index
    %c0_7 = arith.constant 0 : index
    %7 = vector.load %arg2[%c0_6, %c0_7] : memref<352x128xf32, #tpu.memory_space<vmem>>, vector<32x128xf32>
    %c0_8 = arith.constant 0 : index
    %c0_9 = arith.constant 0 : index
    %8 = vector.load %arg3[%c0_8, %c0_9] : memref<24x128xf32, #tpu.memory_space<vmem>>, vector<1x128xf32>
    %cst_10 = arith.constant dense<0.000000e+00> : vector<16x128xf32>
    %9 = tpu.matmul %1, %7, %cst_10 {dimension_numbers = #tpu.dot_dimension_numbers<[1], [0], [0], [1], [0, 0, 1, 1], [], []>} : vector<16x32xf32>, vector<32x128xf32>, vector<16x128xf32> -> vector<16x128xf32>
    %10 = vector.broadcast %8 : vector<1x128xf32> to vector<16x128xf32>
    %11 = arith.addf %9, %10 : vector<16x128xf32>
    %12 = vector.shape_cast %11 : vector<16x128xf32> to vector<2x8x128xf32>
    %13 = vector.extract_strided_slice %12 {offsets = [0, 0, 0], sizes = [2, 8, 8], strides = [1, 1, 1]} : vector<2x8x128xf32> to vector<2x8x8xf32>
    %14 = vector.extract_strided_slice %12 {offsets = [0, 0, 32], sizes = [2, 8, 8], strides = [1, 1, 1]} : vector<2x8x128xf32> to vector<2x8x8xf32>
    %15 = vector.extract_strided_slice %12 {offsets = [0, 0, 64], sizes = [2, 8, 8], strides = [1, 1, 1]} : vector<2x8x128xf32> to vector<2x8x8xf32>
    "tpu.trace_start"() <{level = 10 : i32, message = "bqd,bkd->bqk"}> : () -> ()
    %cst_11 = arith.constant dense<0.000000e+00> : vector<2x8x8xf32>
    %16 = tpu.matmul %13, %14, %cst_11 {dimension_numbers = #tpu.dot_dimension_numbers<[2], [2], [1], [1], [0, 0, 0, 1, 1, 1], [0], [0]>} : vector<2x8x8xf32>, vector<2x8x8xf32>, vector<2x8x8xf32> -> vector<2x8x8xf32>
    "tpu.trace_stop"() : () -> ()
    %cst_12 = arith.constant 0.353553385 : f32
    %17 = vector.broadcast %cst_12 : f32 to vector<2x8x8xf32>
    %18 = arith.mulf %16, %17 : vector<2x8x8xf32>
    %19 = arith.addf %18, %6 : vector<2x8x8xf32>
    %cst_13 = arith.constant dense<0xFF800000> : vector<2x8xf32>
    %20 = vector.multi_reduction <maximumf>, %19, %cst_13 [2] : vector<2x8x8xf32> to vector<2x8xf32>
    %21 = vector.shape_cast %20 : vector<2x8xf32> to vector<2x8x1xf32>
    %22 = vector.broadcast %21 : vector<2x8x1xf32> to vector<2x8x8xf32>
    %23 = arith.subf %19, %22 : vector<2x8x8xf32>
    %24 = math.exp %23 : vector<2x8x8xf32>
    %cst_14 = arith.constant dense<0.000000e+00> : vector<2x8xf32>
    %25 = vector.multi_reduction <add>, %24, %cst_14 [2] : vector<2x8x8xf32> to vector<2x8xf32>
    %26 = vector.shape_cast %25 : vector<2x8xf32> to vector<2x8x1xf32>
    %27 = tpu.reciprocal %26 {approx = true} : vector<2x8x1xf32> -> vector<2x8x1xf32>
    %28 = vector.broadcast %27 : vector<2x8x1xf32> to vector<2x8x8xf32>
    %29 = arith.mulf %24, %28 : vector<2x8x8xf32>
    "tpu.trace_start"() <{level = 10 : i32, message = "bqk,bkd->bqd"}> : () -> ()
    %cst_15 = arith.constant dense<0.000000e+00> : vector<2x8x8xf32>
    %30 = tpu.matmul %29, %15, %cst_15 {dimension_numbers = #tpu.dot_dimension_numbers<[2], [1], [1], [2], [0, 0, 0, 1, 1, 2], [0], [0]>} : vector<2x8x8xf32>, vector<2x8x8xf32>, vector<2x8x8xf32> -> vector<2x8x8xf32>
    "tpu.trace_stop"() : () -> ()
    %31 = vector.extract_strided_slice %12 {offsets = [0, 0, 8], sizes = [2, 8, 8], strides = [1, 1, 1]} : vector<2x8x128xf32> to vector<2x8x8xf32>
    %32 = vector.extract_strided_slice %12 {offsets = [0, 0, 40], sizes = [2, 8, 8], strides = [1, 1, 1]} : vector<2x8x128xf32> to vector<2x8x8xf32>
    %33 = vector.extract_strided_slice %12 {offsets = [0, 0, 72], sizes = [2, 8, 8], strides = [1, 1, 1]} : vector<2x8x128xf32> to vector<2x8x8xf32>
    "tpu.trace_start"() <{level = 10 : i32, message = "bqd,bkd->bqk"}> : () -> ()
    %cst_16 = arith.constant dense<0.000000e+00> : vector<2x8x8xf32>
    %34 = tpu.matmul %31, %32, %cst_16 {dimension_numbers = #tpu.dot_dimension_numbers<[2], [2], [1], [1], [0, 0, 0, 1, 1, 1], [0], [0]>} : vector<2x8x8xf32>, vector<2x8x8xf32>, vector<2x8x8xf32> -> vector<2x8x8xf32>
    "tpu.trace_stop"() : () -> ()
    %cst_17 = arith.constant 0.353553385 : f32
    %35 = vector.broadcast %cst_17 : f32 to vector<2x8x8xf32>
    %36 = arith.mulf %34, %35 : vector<2x8x8xf32>
    %37 = arith.addf %36, %6 : vector<2x8x8xf32>
    %cst_18 = arith.constant dense<0xFF800000> : vector<2x8xf32>
    %38 = vector.multi_reduction <maximumf>, %37, %cst_18 [2] : vector<2x8x8xf32> to vector<2x8xf32>
    %39 = vector.shape_cast %38 : vector<2x8xf32> to vector<2x8x1xf32>
    %40 = vector.broadcast %39 : vector<2x8x1xf32> to vector<2x8x8xf32>
    %41 = arith.subf %37, %40 : vector<2x8x8xf32>
    %42 = math.exp %41 : vector<2x8x8xf32>
    %cst_19 = arith.constant dense<0.000000e+00> : vector<2x8xf32>
    %43 = vector.multi_reduction <add>, %42, %cst_19 [2] : vector<2x8x8xf32> to vector<2x8xf32>
    %44 = vector.shape_cast %43 : vector<2x8xf32> to vector<2x8x1xf32>
    %45 = tpu.reciprocal %44 {approx = true} : vector<2x8x1xf32> -> vector<2x8x1xf32>
    %46 = vector.broadcast %45 : vector<2x8x1xf32> to vector<2x8x8xf32>
    %47 = arith.mulf %42, %46 : vector<2x8x8xf32>
    "tpu.trace_start"() <{level = 10 : i32, message = "bqk,bkd->bqd"}> : () -> ()
    %cst_20 = arith.constant dense<0.000000e+00> : vector<2x8x8xf32>
    %48 = tpu.matmul %47, %33, %cst_20 {dimension_numbers = #tpu.dot_dimension_numbers<[2], [1], [1], [2], [0, 0, 0, 1, 1, 2], [0], [0]>} : vector<2x8x8xf32>, vector<2x8x8xf32>, vector<2x8x8xf32> -> vector<2x8x8xf32>
    "tpu.trace_stop"() : () -> ()
    %49 = vector.extract_strided_slice %12 {offsets = [0, 0, 16], sizes = [2, 8, 8], strides = [1, 1, 1]} : vector<2x8x128xf32> to vector<2x8x8xf32>
    %50 = vector.extract_strided_slice %12 {offsets = [0, 0, 48], sizes = [2, 8, 8], strides = [1, 1, 1]} : vector<2x8x128xf32> to vector<2x8x8xf32>
    %51 = vector.extract_strided_slice %12 {offsets = [0, 0, 80], sizes = [2, 8, 8], strides = [1, 1, 1]} : vector<2x8x128xf32> to vector<2x8x8xf32>
    "tpu.trace_start"() <{level = 10 : i32, message = "bqd,bkd->bqk"}> : () -> ()
    %cst_21 = arith.constant dense<0.000000e+00> : vector<2x8x8xf32>
    %52 = tpu.matmul %49, %50, %cst_21 {dimension_numbers = #tpu.dot_dimension_numbers<[2], [2], [1], [1], [0, 0, 0, 1, 1, 1], [0], [0]>} : vector<2x8x8xf32>, vector<2x8x8xf32>, vector<2x8x8xf32> -> vector<2x8x8xf32>
    "tpu.trace_stop"() : () -> ()
    %cst_22 = arith.constant 0.353553385 : f32
    %53 = vector.broadcast %cst_22 : f32 to vector<2x8x8xf32>
    %54 = arith.mulf %52, %53 : vector<2x8x8xf32>
    %55 = arith.addf %54, %6 : vector<2x8x8xf32>
    %cst_23 = arith.constant dense<0xFF800000> : vector<2x8xf32>
    %56 = vector.multi_reduction <maximumf>, %55, %cst_23 [2] : vector<2x8x8xf32> to vector<2x8xf32>
    %57 = vector.shape_cast %56 : vector<2x8xf32> to vector<2x8x1xf32>
    %58 = vector.broadcast %57 : vector<2x8x1xf32> to vector<2x8x8xf32>
    %59 = arith.subf %55, %58 : vector<2x8x8xf32>
    %60 = math.exp %59 : vector<2x8x8xf32>
    %cst_24 = arith.constant dense<0.000000e+00> : vector<2x8xf32>
    %61 = vector.multi_reduction <add>, %60, %cst_24 [2] : vector<2x8x8xf32> to vector<2x8xf32>
    %62 = vector.shape_cast %61 : vector<2x8xf32> to vector<2x8x1xf32>
    %63 = tpu.reciprocal %62 {approx = true} : vector<2x8x1xf32> -> vector<2x8x1xf32>
    %64 = vector.broadcast %63 : vector<2x8x1xf32> to vector<2x8x8xf32>
    %65 = arith.mulf %60, %64 : vector<2x8x8xf32>
    "tpu.trace_start"() <{level = 10 : i32, message = "bqk,bkd->bqd"}> : () -> ()
    %cst_25 = arith.constant dense<0.000000e+00> : vector<2x8x8xf32>
    %66 = tpu.matmul %65, %51, %cst_25 {dimension_numbers = #tpu.dot_dimension_numbers<[2], [1], [1], [2], [0, 0, 0, 1, 1, 2], [0], [0]>} : vector<2x8x8xf32>, vector<2x8x8xf32>, vector<2x8x8xf32> -> vector<2x8x8xf32>
    "tpu.trace_stop"() : () -> ()
    %67 = vector.extract_strided_slice %12 {offsets = [0, 0, 24], sizes = [2, 8, 8], strides = [1, 1, 1]} : vector<2x8x128xf32> to vector<2x8x8xf32>
    %68 = vector.extract_strided_slice %12 {offsets = [0, 0, 56], sizes = [2, 8, 8], strides = [1, 1, 1]} : vector<2x8x128xf32> to vector<2x8x8xf32>
    %69 = vector.extract_strided_slice %12 {offsets = [0, 0, 88], sizes = [2, 8, 8], strides = [1, 1, 1]} : vector<2x8x128xf32> to vector<2x8x8xf32>
    "tpu.trace_start"() <{level = 10 : i32, message = "bqd,bkd->bqk"}> : () -> ()
    %cst_26 = arith.constant dense<0.000000e+00> : vector<2x8x8xf32>
    %70 = tpu.matmul %67, %68, %cst_26 {dimension_numbers = #tpu.dot_dimension_numbers<[2], [2], [1], [1], [0, 0, 0, 1, 1, 1], [0], [0]>} : vector<2x8x8xf32>, vector<2x8x8xf32>, vector<2x8x8xf32> -> vector<2x8x8xf32>
    "tpu.trace_stop"() : () -> ()
    %cst_27 = arith.constant 0.353553385 : f32
    %71 = vector.broadcast %cst_27 : f32 to vector<2x8x8xf32>
    %72 = arith.mulf %70, %71 : vector<2x8x8xf32>
    %73 = arith.addf %72, %6 : vector<2x8x8xf32>
    %cst_28 = arith.constant dense<0xFF800000> : vector<2x8xf32>
    %74 = vector.multi_reduction <maximumf>, %73, %cst_28 [2] : vector<2x8x8xf32> to vector<2x8xf32>
    %75 = vector.shape_cast %74 : vector<2x8xf32> to vector<2x8x1xf32>
    %76 = vector.broadcast %75 : vector<2x8x1xf32> to vector<2x8x8xf32>
    %77 = arith.subf %73, %76 : vector<2x8x8xf32>
    %78 = math.exp %77 : vector<2x8x8xf32>
    %cst_29 = arith.constant dense<0.000000e+00> : vector<2x8xf32>
    %79 = vector.multi_reduction <add>, %78, %cst_29 [2] : vector<2x8x8xf32> to vector<2x8xf32>
    %80 = vector.shape_cast %79 : vector<2x8xf32> to vector<2x8x1xf32>
    %81 = tpu.reciprocal %80 {approx = true} : vector<2x8x1xf32> -> vector<2x8x1xf32>
    %82 = vector.broadcast %81 : vector<2x8x1xf32> to vector<2x8x8xf32>
    %83 = arith.mulf %78, %82 : vector<2x8x8xf32>
    "tpu.trace_start"() <{level = 10 : i32, message = "bqk,bkd->bqd"}> : () -> ()
    %cst_30 = arith.constant dense<0.000000e+00> : vector<2x8x8xf32>
    %84 = tpu.matmul %83, %69, %cst_30 {dimension_numbers = #tpu.dot_dimension_numbers<[2], [1], [1], [2], [0, 0, 0, 1, 1, 2], [0], [0]>} : vector<2x8x8xf32>, vector<2x8x8xf32>, vector<2x8x8xf32> -> vector<2x8x8xf32>
    "tpu.trace_stop"() : () -> ()
    %85 = tpu.concatenate %30, %48, %66, %84 in 2 : vector<2x8x8xf32>, vector<2x8x8xf32>, vector<2x8x8xf32>, vector<2x8x8xf32> -> vector<2x8x32xf32>
    %86 = vector.shape_cast %85 : vector<2x8x32xf32> to vector<16x32xf32>
    %c32 = arith.constant 32 : index
    %c0_31 = arith.constant 0 : index
    %87 = vector.load %arg2[%c32, %c0_31] : memref<352x128xf32, #tpu.memory_space<vmem>>, vector<32x32xf32>
    %c1 = arith.constant 1 : index
    %c0_32 = arith.constant 0 : index
    %88 = vector.load %arg3[%c1, %c0_32] : memref<24x128xf32, #tpu.memory_space<vmem>>, vector<1x32xf32>
    %cst_33 = arith.constant dense<0.000000e+00> : vector<16x32xf32>
    %89 = tpu.matmul %86, %87, %cst_33 {dimension_numbers = #tpu.dot_dimension_numbers<[1], [0], [0], [1], [0, 0, 1, 1], [], []>} : vector<16x32xf32>, vector<32x32xf32>, vector<16x32xf32> -> vector<16x32xf32>
    %90 = vector.broadcast %88 : vector<1x32xf32> to vector<16x32xf32>
    %91 = arith.addf %89, %90 : vector<16x32xf32>
    %c4 = arith.constant 4 : index
    %c0_34 = arith.constant 0 : index
    %92 = vector.load %arg3[%c4, %c0_34] : memref<24x128xf32, #tpu.memory_space<vmem>>, vector<1x32xf32>
    %c5 = arith.constant 5 : index
    %c0_35 = arith.constant 0 : index
    %93 = vector.load %arg3[%c5, %c0_35] : memref<24x128xf32, #tpu.memory_space<vmem>>, vector<1x32xf32>
    %94 = arith.addf %1, %91 : vector<16x32xf32>
    %cst_36 = arith.constant dense<0.000000e+00> : vector<16xf32>
    %95 = vector.multi_reduction <add>, %94, %cst_36 [1] : vector<16x32xf32> to vector<16xf32>
    %96 = vector.shape_cast %95 : vector<16xf32> to vector<16x1xf32>
    %cst_37 = arith.constant 3.200000e+01 : f32
    %97 = vector.broadcast %cst_37 : f32 to vector<16x1xf32>
    %98 = arith.divf %96, %97 : vector<16x1xf32>
    %99 = arith.mulf %94, %94 : vector<16x32xf32>
    %cst_38 = arith.constant dense<0.000000e+00> : vector<16xf32>
    %100 = vector.multi_reduction <add>, %99, %cst_38 [1] : vector<16x32xf32> to vector<16xf32>
    %101 = vector.shape_cast %100 : vector<16xf32> to vector<16x1xf32>
    %cst_39 = arith.constant 3.200000e+01 : f32
    %102 = vector.broadcast %cst_39 : f32 to vector<16x1xf32>
    %103 = arith.divf %101, %102 : vector<16x1xf32>
    %104 = arith.mulf %98, %98 : vector<16x1xf32>
    %105 = arith.subf %103, %104 : vector<16x1xf32>
    %106 = vector.broadcast %98 : vector<16x1xf32> to vector<16x32xf32>
    %107 = arith.subf %94, %106 : vector<16x32xf32>
    %cst_40 = arith.constant 9.99999974E-6 : f32
    %108 = vector.broadcast %cst_40 : f32 to vector<16x1xf32>
    %109 = arith.addf %105, %108 : vector<16x1xf32>
    %110 = math.rsqrt %109 : vector<16x1xf32>
    %111 = vector.broadcast %110 : vector<16x1xf32> to vector<16x32xf32>
    %112 = arith.mulf %107, %111 : vector<16x32xf32>
    %113 = vector.broadcast %92 : vector<1x32xf32> to vector<16x32xf32>
    %114 = arith.mulf %112, %113 : vector<16x32xf32>
    %115 = vector.broadcast %93 : vector<1x32xf32> to vector<16x32xf32>
    %116 = arith.addf %114, %115 : vector<16x32xf32>
    %c64 = arith.constant 64 : index
    %c0_41 = arith.constant 0 : index
    %117 = vector.load %arg2[%c64, %c0_41] : memref<352x128xf32, #tpu.memory_space<vmem>>, vector<32x64xf32>
    %c2 = arith.constant 2 : index
    %c0_42 = arith.constant 0 : index
    %118 = vector.load %arg3[%c2, %c0_42] : memref<24x128xf32, #tpu.memory_space<vmem>>, vector<1x64xf32>
    %c96 = arith.constant 96 : index
    %c0_43 = arith.constant 0 : index
    %119 = vector.load %arg2[%c96, %c0_43] : memref<352x128xf32, #tpu.memory_space<vmem>>, vector<64x32xf32>
    %c3 = arith.constant 3 : index
    %c0_44 = arith.constant 0 : index
    %120 = vector.load %arg3[%c3, %c0_44] : memref<24x128xf32, #tpu.memory_space<vmem>>, vector<1x32xf32>
    %cst_45 = arith.constant dense<0.000000e+00> : vector<16x64xf32>
    %121 = tpu.matmul %116, %117, %cst_45 {dimension_numbers = #tpu.dot_dimension_numbers<[1], [0], [0], [1], [0, 0, 1, 1], [], []>} : vector<16x32xf32>, vector<32x64xf32>, vector<16x64xf32> -> vector<16x64xf32>
    %122 = vector.broadcast %118 : vector<1x64xf32> to vector<16x64xf32>
    %123 = arith.addf %121, %122 : vector<16x64xf32>
    %cst_46 = arith.constant 0.000000e+00 : f32
    %124 = vector.broadcast %cst_46 : f32 to vector<16x64xf32>
    %125 = arith.maximumf %123, %124 : vector<16x64xf32>
    %cst_47 = arith.constant dense<0.000000e+00> : vector<16x32xf32>
    %126 = tpu.matmul %125, %119, %cst_47 {dimension_numbers = #tpu.dot_dimension_numbers<[1], [0], [0], [1], [0, 0, 1, 1], [], []>} : vector<16x64xf32>, vector<64x32xf32>, vector<16x32xf32> -> vector<16x32xf32>
    %127 = vector.broadcast %120 : vector<1x32xf32> to vector<16x32xf32>
    %128 = arith.addf %126, %127 : vector<16x32xf32>
    %c6 = arith.constant 6 : index
    %c0_48 = arith.constant 0 : index
    %129 = vector.load %arg3[%c6, %c0_48] : memref<24x128xf32, #tpu.memory_space<vmem>>, vector<1x32xf32>
    %c7 = arith.constant 7 : index
    %c0_49 = arith.constant 0 : index
    %130 = vector.load %arg3[%c7, %c0_49] : memref<24x128xf32, #tpu.memory_space<vmem>>, vector<1x32xf32>
    %131 = arith.addf %116, %128 : vector<16x32xf32>
    %cst_50 = arith.constant dense<0.000000e+00> : vector<16xf32>
    %132 = vector.multi_reduction <add>, %131, %cst_50 [1] : vector<16x32xf32> to vector<16xf32>
    %133 = vector.shape_cast %132 : vector<16xf32> to vector<16x1xf32>
    %cst_51 = arith.constant 3.200000e+01 : f32
    %134 = vector.broadcast %cst_51 : f32 to vector<16x1xf32>
    %135 = arith.divf %133, %134 : vector<16x1xf32>
    %136 = arith.mulf %131, %131 : vector<16x32xf32>
    %cst_52 = arith.constant dense<0.000000e+00> : vector<16xf32>
    %137 = vector.multi_reduction <add>, %136, %cst_52 [1] : vector<16x32xf32> to vector<16xf32>
    %138 = vector.shape_cast %137 : vector<16xf32> to vector<16x1xf32>
    %cst_53 = arith.constant 3.200000e+01 : f32
    %139 = vector.broadcast %cst_53 : f32 to vector<16x1xf32>
    %140 = arith.divf %138, %139 : vector<16x1xf32>
    %141 = arith.mulf %135, %135 : vector<16x1xf32>
    %142 = arith.subf %140, %141 : vector<16x1xf32>
    %143 = vector.broadcast %135 : vector<16x1xf32> to vector<16x32xf32>
    %144 = arith.subf %131, %143 : vector<16x32xf32>
    %cst_54 = arith.constant 9.99999974E-6 : f32
    %145 = vector.broadcast %cst_54 : f32 to vector<16x1xf32>
    %146 = arith.addf %142, %145 : vector<16x1xf32>
    %147 = math.rsqrt %146 : vector<16x1xf32>
    %148 = vector.broadcast %147 : vector<16x1xf32> to vector<16x32xf32>
    %149 = arith.mulf %144, %148 : vector<16x32xf32>
    %150 = vector.broadcast %129 : vector<1x32xf32> to vector<16x32xf32>
    %151 = arith.mulf %149, %150 : vector<16x32xf32>
    %152 = vector.broadcast %130 : vector<1x32xf32> to vector<16x32xf32>
    %153 = arith.addf %151, %152 : vector<16x32xf32>
    %c160 = arith.constant 160 : index
    %c0_55 = arith.constant 0 : index
    %154 = vector.load %arg2[%c160, %c0_55] : memref<352x128xf32, #tpu.memory_space<vmem>>, vector<32x128xf32>
    %c8 = arith.constant 8 : index
    %c0_56 = arith.constant 0 : index
    %155 = vector.load %arg3[%c8, %c0_56] : memref<24x128xf32, #tpu.memory_space<vmem>>, vector<1x128xf32>
    %cst_57 = arith.constant dense<0.000000e+00> : vector<16x128xf32>
    %156 = tpu.matmul %153, %154, %cst_57 {dimension_numbers = #tpu.dot_dimension_numbers<[1], [0], [0], [1], [0, 0, 1, 1], [], []>} : vector<16x32xf32>, vector<32x128xf32>, vector<16x128xf32> -> vector<16x128xf32>
    %157 = vector.broadcast %155 : vector<1x128xf32> to vector<16x128xf32>
    %158 = arith.addf %156, %157 : vector<16x128xf32>
    %159 = vector.shape_cast %158 : vector<16x128xf32> to vector<2x8x128xf32>
    %160 = vector.extract_strided_slice %159 {offsets = [0, 0, 0], sizes = [2, 8, 8], strides = [1, 1, 1]} : vector<2x8x128xf32> to vector<2x8x8xf32>
    %161 = vector.extract_strided_slice %159 {offsets = [0, 0, 32], sizes = [2, 8, 8], strides = [1, 1, 1]} : vector<2x8x128xf32> to vector<2x8x8xf32>
    %162 = vector.extract_strided_slice %159 {offsets = [0, 0, 64], sizes = [2, 8, 8], strides = [1, 1, 1]} : vector<2x8x128xf32> to vector<2x8x8xf32>
    "tpu.trace_start"() <{level = 10 : i32, message = "bqd,bkd->bqk"}> : () -> ()
    %cst_58 = arith.constant dense<0.000000e+00> : vector<2x8x8xf32>
    %163 = tpu.matmul %160, %161, %cst_58 {dimension_numbers = #tpu.dot_dimension_numbers<[2], [2], [1], [1], [0, 0, 0, 1, 1, 1], [0], [0]>} : vector<2x8x8xf32>, vector<2x8x8xf32>, vector<2x8x8xf32> -> vector<2x8x8xf32>
    "tpu.trace_stop"() : () -> ()
    %cst_59 = arith.constant 0.353553385 : f32
    %164 = vector.broadcast %cst_59 : f32 to vector<2x8x8xf32>
    %165 = arith.mulf %163, %164 : vector<2x8x8xf32>
    %166 = arith.addf %165, %6 : vector<2x8x8xf32>
    %cst_60 = arith.constant dense<0xFF800000> : vector<2x8xf32>
    %167 = vector.multi_reduction <maximumf>, %166, %cst_60 [2] : vector<2x8x8xf32> to vector<2x8xf32>
    %168 = vector.shape_cast %167 : vector<2x8xf32> to vector<2x8x1xf32>
    %169 = vector.broadcast %168 : vector<2x8x1xf32> to vector<2x8x8xf32>
    %170 = arith.subf %166, %169 : vector<2x8x8xf32>
    %171 = math.exp %170 : vector<2x8x8xf32>
    %cst_61 = arith.constant dense<0.000000e+00> : vector<2x8xf32>
    %172 = vector.multi_reduction <add>, %171, %cst_61 [2] : vector<2x8x8xf32> to vector<2x8xf32>
    %173 = vector.shape_cast %172 : vector<2x8xf32> to vector<2x8x1xf32>
    %174 = tpu.reciprocal %173 {approx = true} : vector<2x8x1xf32> -> vector<2x8x1xf32>
    %175 = vector.broadcast %174 : vector<2x8x1xf32> to vector<2x8x8xf32>
    %176 = arith.mulf %171, %175 : vector<2x8x8xf32>
    "tpu.trace_start"() <{level = 10 : i32, message = "bqk,bkd->bqd"}> : () -> ()
    %cst_62 = arith.constant dense<0.000000e+00> : vector<2x8x8xf32>
    %177 = tpu.matmul %176, %162, %cst_62 {dimension_numbers = #tpu.dot_dimension_numbers<[2], [1], [1], [2], [0, 0, 0, 1, 1, 2], [0], [0]>} : vector<2x8x8xf32>, vector<2x8x8xf32>, vector<2x8x8xf32> -> vector<2x8x8xf32>
    "tpu.trace_stop"() : () -> ()
    %178 = vector.extract_strided_slice %159 {offsets = [0, 0, 8], sizes = [2, 8, 8], strides = [1, 1, 1]} : vector<2x8x128xf32> to vector<2x8x8xf32>
    %179 = vector.extract_strided_slice %159 {offsets = [0, 0, 40], sizes = [2, 8, 8], strides = [1, 1, 1]} : vector<2x8x128xf32> to vector<2x8x8xf32>
    %180 = vector.extract_strided_slice %159 {offsets = [0, 0, 72], sizes = [2, 8, 8], strides = [1, 1, 1]} : vector<2x8x128xf32> to vector<2x8x8xf32>
    "tpu.trace_start"() <{level = 10 : i32, message = "bqd,bkd->bqk"}> : () -> ()
    %cst_63 = arith.constant dense<0.000000e+00> : vector<2x8x8xf32>
    %181 = tpu.matmul %178, %179, %cst_63 {dimension_numbers = #tpu.dot_dimension_numbers<[2], [2], [1], [1], [0, 0, 0, 1, 1, 1], [0], [0]>} : vector<2x8x8xf32>, vector<2x8x8xf32>, vector<2x8x8xf32> -> vector<2x8x8xf32>
    "tpu.trace_stop"() : () -> ()
    %cst_64 = arith.constant 0.353553385 : f32
    %182 = vector.broadcast %cst_64 : f32 to vector<2x8x8xf32>
    %183 = arith.mulf %181, %182 : vector<2x8x8xf32>
    %184 = arith.addf %183, %6 : vector<2x8x8xf32>
    %cst_65 = arith.constant dense<0xFF800000> : vector<2x8xf32>
    %185 = vector.multi_reduction <maximumf>, %184, %cst_65 [2] : vector<2x8x8xf32> to vector<2x8xf32>
    %186 = vector.shape_cast %185 : vector<2x8xf32> to vector<2x8x1xf32>
    %187 = vector.broadcast %186 : vector<2x8x1xf32> to vector<2x8x8xf32>
    %188 = arith.subf %184, %187 : vector<2x8x8xf32>
    %189 = math.exp %188 : vector<2x8x8xf32>
    %cst_66 = arith.constant dense<0.000000e+00> : vector<2x8xf32>
    %190 = vector.multi_reduction <add>, %189, %cst_66 [2] : vector<2x8x8xf32> to vector<2x8xf32>
    %191 = vector.shape_cast %190 : vector<2x8xf32> to vector<2x8x1xf32>
    %192 = tpu.reciprocal %191 {approx = true} : vector<2x8x1xf32> -> vector<2x8x1xf32>
    %193 = vector.broadcast %192 : vector<2x8x1xf32> to vector<2x8x8xf32>
    %194 = arith.mulf %189, %193 : vector<2x8x8xf32>
    "tpu.trace_start"() <{level = 10 : i32, message = "bqk,bkd->bqd"}> : () -> ()
    %cst_67 = arith.constant dense<0.000000e+00> : vector<2x8x8xf32>
    %195 = tpu.matmul %194, %180, %cst_67 {dimension_numbers = #tpu.dot_dimension_numbers<[2], [1], [1], [2], [0, 0, 0, 1, 1, 2], [0], [0]>} : vector<2x8x8xf32>, vector<2x8x8xf32>, vector<2x8x8xf32> -> vector<2x8x8xf32>
    "tpu.trace_stop"() : () -> ()
    %196 = vector.extract_strided_slice %159 {offsets = [0, 0, 16], sizes = [2, 8, 8], strides = [1, 1, 1]} : vector<2x8x128xf32> to vector<2x8x8xf32>
    %197 = vector.extract_strided_slice %159 {offsets = [0, 0, 48], sizes = [2, 8, 8], strides = [1, 1, 1]} : vector<2x8x128xf32> to vector<2x8x8xf32>
    %198 = vector.extract_strided_slice %159 {offsets = [0, 0, 80], sizes = [2, 8, 8], strides = [1, 1, 1]} : vector<2x8x128xf32> to vector<2x8x8xf32>
    "tpu.trace_start"() <{level = 10 : i32, message = "bqd,bkd->bqk"}> : () -> ()
    %cst_68 = arith.constant dense<0.000000e+00> : vector<2x8x8xf32>
    %199 = tpu.matmul %196, %197, %cst_68 {dimension_numbers = #tpu.dot_dimension_numbers<[2], [2], [1], [1], [0, 0, 0, 1, 1, 1], [0], [0]>} : vector<2x8x8xf32>, vector<2x8x8xf32>, vector<2x8x8xf32> -> vector<2x8x8xf32>
    "tpu.trace_stop"() : () -> ()
    %cst_69 = arith.constant 0.353553385 : f32
    %200 = vector.broadcast %cst_69 : f32 to vector<2x8x8xf32>
    %201 = arith.mulf %199, %200 : vector<2x8x8xf32>
    %202 = arith.addf %201, %6 : vector<2x8x8xf32>
    %cst_70 = arith.constant dense<0xFF800000> : vector<2x8xf32>
    %203 = vector.multi_reduction <maximumf>, %202, %cst_70 [2] : vector<2x8x8xf32> to vector<2x8xf32>
    %204 = vector.shape_cast %203 : vector<2x8xf32> to vector<2x8x1xf32>
    %205 = vector.broadcast %204 : vector<2x8x1xf32> to vector<2x8x8xf32>
    %206 = arith.subf %202, %205 : vector<2x8x8xf32>
    %207 = math.exp %206 : vector<2x8x8xf32>
    %cst_71 = arith.constant dense<0.000000e+00> : vector<2x8xf32>
    %208 = vector.multi_reduction <add>, %207, %cst_71 [2] : vector<2x8x8xf32> to vector<2x8xf32>
    %209 = vector.shape_cast %208 : vector<2x8xf32> to vector<2x8x1xf32>
    %210 = tpu.reciprocal %209 {approx = true} : vector<2x8x1xf32> -> vector<2x8x1xf32>
    %211 = vector.broadcast %210 : vector<2x8x1xf32> to vector<2x8x8xf32>
    %212 = arith.mulf %207, %211 : vector<2x8x8xf32>
    "tpu.trace_start"() <{level = 10 : i32, message = "bqk,bkd->bqd"}> : () -> ()
    %cst_72 = arith.constant dense<0.000000e+00> : vector<2x8x8xf32>
    %213 = tpu.matmul %212, %198, %cst_72 {dimension_numbers = #tpu.dot_dimension_numbers<[2], [1], [1], [2], [0, 0, 0, 1, 1, 2], [0], [0]>} : vector<2x8x8xf32>, vector<2x8x8xf32>, vector<2x8x8xf32> -> vector<2x8x8xf32>
    "tpu.trace_stop"() : () -> ()
    %214 = vector.extract_strided_slice %159 {offsets = [0, 0, 24], sizes = [2, 8, 8], strides = [1, 1, 1]} : vector<2x8x128xf32> to vector<2x8x8xf32>
    %215 = vector.extract_strided_slice %159 {offsets = [0, 0, 56], sizes = [2, 8, 8], strides = [1, 1, 1]} : vector<2x8x128xf32> to vector<2x8x8xf32>
    %216 = vector.extract_strided_slice %159 {offsets = [0, 0, 88], sizes = [2, 8, 8], strides = [1, 1, 1]} : vector<2x8x128xf32> to vector<2x8x8xf32>
    "tpu.trace_start"() <{level = 10 : i32, message = "bqd,bkd->bqk"}> : () -> ()
    %cst_73 = arith.constant dense<0.000000e+00> : vector<2x8x8xf32>
    %217 = tpu.matmul %214, %215, %cst_73 {dimension_numbers = #tpu.dot_dimension_numbers<[2], [2], [1], [1], [0, 0, 0, 1, 1, 1], [0], [0]>} : vector<2x8x8xf32>, vector<2x8x8xf32>, vector<2x8x8xf32> -> vector<2x8x8xf32>
    "tpu.trace_stop"() : () -> ()
    %cst_74 = arith.constant 0.353553385 : f32
    %218 = vector.broadcast %cst_74 : f32 to vector<2x8x8xf32>
    %219 = arith.mulf %217, %218 : vector<2x8x8xf32>
    %220 = arith.addf %219, %6 : vector<2x8x8xf32>
    %cst_75 = arith.constant dense<0xFF800000> : vector<2x8xf32>
    %221 = vector.multi_reduction <maximumf>, %220, %cst_75 [2] : vector<2x8x8xf32> to vector<2x8xf32>
    %222 = vector.shape_cast %221 : vector<2x8xf32> to vector<2x8x1xf32>
    %223 = vector.broadcast %222 : vector<2x8x1xf32> to vector<2x8x8xf32>
    %224 = arith.subf %220, %223 : vector<2x8x8xf32>
    %225 = math.exp %224 : vector<2x8x8xf32>
    %cst_76 = arith.constant dense<0.000000e+00> : vector<2x8xf32>
    %226 = vector.multi_reduction <add>, %225, %cst_76 [2] : vector<2x8x8xf32> to vector<2x8xf32>
    %227 = vector.shape_cast %226 : vector<2x8xf32> to vector<2x8x1xf32>
    %228 = tpu.reciprocal %227 {approx = true} : vector<2x8x1xf32> -> vector<2x8x1xf32>
    %229 = vector.broadcast %228 : vector<2x8x1xf32> to vector<2x8x8xf32>
    %230 = arith.mulf %225, %229 : vector<2x8x8xf32>
    "tpu.trace_start"() <{level = 10 : i32, message = "bqk,bkd->bqd"}> : () -> ()
    %cst_77 = arith.constant dense<0.000000e+00> : vector<2x8x8xf32>
    %231 = tpu.matmul %230, %216, %cst_77 {dimension_numbers = #tpu.dot_dimension_numbers<[2], [1], [1], [2], [0, 0, 0, 1, 1, 2], [0], [0]>} : vector<2x8x8xf32>, vector<2x8x8xf32>, vector<2x8x8xf32> -> vector<2x8x8xf32>
    "tpu.trace_stop"() : () -> ()
    %232 = tpu.concatenate %177, %195, %213, %231 in 2 : vector<2x8x8xf32>, vector<2x8x8xf32>, vector<2x8x8xf32>, vector<2x8x8xf32> -> vector<2x8x32xf32>
    %233 = vector.shape_cast %232 : vector<2x8x32xf32> to vector<16x32xf32>
    %c192 = arith.constant 192 : index
    %c0_78 = arith.constant 0 : index
    %234 = vector.load %arg2[%c192, %c0_78] : memref<352x128xf32, #tpu.memory_space<vmem>>, vector<32x32xf32>
    %c9 = arith.constant 9 : index
    %c0_79 = arith.constant 0 : index
    %235 = vector.load %arg3[%c9, %c0_79] : memref<24x128xf32, #tpu.memory_space<vmem>>, vector<1x32xf32>
    %cst_80 = arith.constant dense<0.000000e+00> : vector<16x32xf32>
    %236 = tpu.matmul %233, %234, %cst_80 {dimension_numbers = #tpu.dot_dimension_numbers<[1], [0], [0], [1], [0, 0, 1, 1], [], []>} : vector<16x32xf32>, vector<32x32xf32>, vector<16x32xf32> -> vector<16x32xf32>
    %237 = vector.broadcast %235 : vector<1x32xf32> to vector<16x32xf32>
    %238 = arith.addf %236, %237 : vector<16x32xf32>
    %c12 = arith.constant 12 : index
    %c0_81 = arith.constant 0 : index
    %239 = vector.load %arg3[%c12, %c0_81] : memref<24x128xf32, #tpu.memory_space<vmem>>, vector<1x32xf32>
    %c13 = arith.constant 13 : index
    %c0_82 = arith.constant 0 : index
    %240 = vector.load %arg3[%c13, %c0_82] : memref<24x128xf32, #tpu.memory_space<vmem>>, vector<1x32xf32>
    %241 = arith.addf %153, %238 : vector<16x32xf32>
    %cst_83 = arith.constant dense<0.000000e+00> : vector<16xf32>
    %242 = vector.multi_reduction <add>, %241, %cst_83 [1] : vector<16x32xf32> to vector<16xf32>
    %243 = vector.shape_cast %242 : vector<16xf32> to vector<16x1xf32>
    %cst_84 = arith.constant 3.200000e+01 : f32
    %244 = vector.broadcast %cst_84 : f32 to vector<16x1xf32>
    %245 = arith.divf %243, %244 : vector<16x1xf32>
    %246 = arith.mulf %241, %241 : vector<16x32xf32>
    %cst_85 = arith.constant dense<0.000000e+00> : vector<16xf32>
    %247 = vector.multi_reduction <add>, %246, %cst_85 [1] : vector<16x32xf32> to vector<16xf32>
    %248 = vector.shape_cast %247 : vector<16xf32> to vector<16x1xf32>
    %cst_86 = arith.constant 3.200000e+01 : f32
    %249 = vector.broadcast %cst_86 : f32 to vector<16x1xf32>
    %250 = arith.divf %248, %249 : vector<16x1xf32>
    %251 = arith.mulf %245, %245 : vector<16x1xf32>
    %252 = arith.subf %250, %251 : vector<16x1xf32>
    %253 = vector.broadcast %245 : vector<16x1xf32> to vector<16x32xf32>
    %254 = arith.subf %241, %253 : vector<16x32xf32>
    %cst_87 = arith.constant 9.99999974E-6 : f32
    %255 = vector.broadcast %cst_87 : f32 to vector<16x1xf32>
    %256 = arith.addf %252, %255 : vector<16x1xf32>
    %257 = math.rsqrt %256 : vector<16x1xf32>
    %258 = vector.broadcast %257 : vector<16x1xf32> to vector<16x32xf32>
    %259 = arith.mulf %254, %258 : vector<16x32xf32>
    %260 = vector.broadcast %239 : vector<1x32xf32> to vector<16x32xf32>
    %261 = arith.mulf %259, %260 : vector<16x32xf32>
    %262 = vector.broadcast %240 : vector<1x32xf32> to vector<16x32xf32>
    %263 = arith.addf %261, %262 : vector<16x32xf32>
    %c224 = arith.constant 224 : index
    %c0_88 = arith.constant 0 : index
    %264 = vector.load %arg2[%c224, %c0_88] : memref<352x128xf32, #tpu.memory_space<vmem>>, vector<32x64xf32>
    %c10 = arith.constant 10 : index
    %c0_89 = arith.constant 0 : index
    %265 = vector.load %arg3[%c10, %c0_89] : memref<24x128xf32, #tpu.memory_space<vmem>>, vector<1x64xf32>
    %c256 = arith.constant 256 : index
    %c0_90 = arith.constant 0 : index
    %266 = vector.load %arg2[%c256, %c0_90] : memref<352x128xf32, #tpu.memory_space<vmem>>, vector<64x32xf32>
    %c11 = arith.constant 11 : index
    %c0_91 = arith.constant 0 : index
    %267 = vector.load %arg3[%c11, %c0_91] : memref<24x128xf32, #tpu.memory_space<vmem>>, vector<1x32xf32>
    %cst_92 = arith.constant dense<0.000000e+00> : vector<16x64xf32>
    %268 = tpu.matmul %263, %264, %cst_92 {dimension_numbers = #tpu.dot_dimension_numbers<[1], [0], [0], [1], [0, 0, 1, 1], [], []>} : vector<16x32xf32>, vector<32x64xf32>, vector<16x64xf32> -> vector<16x64xf32>
    %269 = vector.broadcast %265 : vector<1x64xf32> to vector<16x64xf32>
    %270 = arith.addf %268, %269 : vector<16x64xf32>
    %cst_93 = arith.constant 0.000000e+00 : f32
    %271 = vector.broadcast %cst_93 : f32 to vector<16x64xf32>
    %272 = arith.maximumf %270, %271 : vector<16x64xf32>
    %cst_94 = arith.constant dense<0.000000e+00> : vector<16x32xf32>
    %273 = tpu.matmul %272, %266, %cst_94 {dimension_numbers = #tpu.dot_dimension_numbers<[1], [0], [0], [1], [0, 0, 1, 1], [], []>} : vector<16x64xf32>, vector<64x32xf32>, vector<16x32xf32> -> vector<16x32xf32>
    %274 = vector.broadcast %267 : vector<1x32xf32> to vector<16x32xf32>
    %275 = arith.addf %273, %274 : vector<16x32xf32>
    %c14 = arith.constant 14 : index
    %c0_95 = arith.constant 0 : index
    %276 = vector.load %arg3[%c14, %c0_95] : memref<24x128xf32, #tpu.memory_space<vmem>>, vector<1x32xf32>
    %c15 = arith.constant 15 : index
    %c0_96 = arith.constant 0 : index
    %277 = vector.load %arg3[%c15, %c0_96] : memref<24x128xf32, #tpu.memory_space<vmem>>, vector<1x32xf32>
    %278 = arith.addf %263, %275 : vector<16x32xf32>
    %cst_97 = arith.constant dense<0.000000e+00> : vector<16xf32>
    %279 = vector.multi_reduction <add>, %278, %cst_97 [1] : vector<16x32xf32> to vector<16xf32>
    %280 = vector.shape_cast %279 : vector<16xf32> to vector<16x1xf32>
    %cst_98 = arith.constant 3.200000e+01 : f32
    %281 = vector.broadcast %cst_98 : f32 to vector<16x1xf32>
    %282 = arith.divf %280, %281 : vector<16x1xf32>
    %283 = arith.mulf %278, %278 : vector<16x32xf32>
    %cst_99 = arith.constant dense<0.000000e+00> : vector<16xf32>
    %284 = vector.multi_reduction <add>, %283, %cst_99 [1] : vector<16x32xf32> to vector<16xf32>
    %285 = vector.shape_cast %284 : vector<16xf32> to vector<16x1xf32>
    %cst_100 = arith.constant 3.200000e+01 : f32
    %286 = vector.broadcast %cst_100 : f32 to vector<16x1xf32>
    %287 = arith.divf %285, %286 : vector<16x1xf32>
    %288 = arith.mulf %282, %282 : vector<16x1xf32>
    %289 = arith.subf %287, %288 : vector<16x1xf32>
    %290 = vector.broadcast %282 : vector<16x1xf32> to vector<16x32xf32>
    %291 = arith.subf %278, %290 : vector<16x32xf32>
    %cst_101 = arith.constant 9.99999974E-6 : f32
    %292 = vector.broadcast %cst_101 : f32 to vector<16x1xf32>
    %293 = arith.addf %289, %292 : vector<16x1xf32>
    %294 = math.rsqrt %293 : vector<16x1xf32>
    %295 = vector.broadcast %294 : vector<16x1xf32> to vector<16x32xf32>
    %296 = arith.mulf %291, %295 : vector<16x32xf32>
    %297 = vector.broadcast %276 : vector<1x32xf32> to vector<16x32xf32>
    %298 = arith.mulf %296, %297 : vector<16x32xf32>
    %299 = vector.broadcast %277 : vector<1x32xf32> to vector<16x32xf32>
    %300 = arith.addf %298, %299 : vector<16x32xf32>
    %c320 = arith.constant 320 : index
    %c0_102 = arith.constant 0 : index
    %301 = vector.load %arg2[%c320, %c0_102] : memref<352x128xf32, #tpu.memory_space<vmem>>, vector<32x128xf32>
    %c16 = arith.constant 16 : index
    %c0_103 = arith.constant 0 : index
    %302 = vector.load %arg3[%c16, %c0_103] : memref<24x128xf32, #tpu.memory_space<vmem>>, vector<1x128xf32>
    %cst_104 = arith.constant dense<0.000000e+00> : vector<16x128xf32>
    %303 = tpu.matmul %300, %301, %cst_104 {dimension_numbers = #tpu.dot_dimension_numbers<[1], [0], [0], [1], [0, 0, 1, 1], [], []>} : vector<16x32xf32>, vector<32x128xf32>, vector<16x128xf32> -> vector<16x128xf32>
    %304 = vector.broadcast %302 : vector<1x128xf32> to vector<16x128xf32>
    %305 = arith.addf %303, %304 : vector<16x128xf32>
    %cst_105 = arith.constant dense<0xFF800000> : vector<16xf32>
    %306 = vector.multi_reduction <maximumf>, %305, %cst_105 [1] : vector<16x128xf32> to vector<16xf32>
    %307 = vector.shape_cast %306 : vector<16xf32> to vector<16x1xf32>
    %308 = vector.broadcast %307 : vector<16x1xf32> to vector<16x128xf32>
    %309 = arith.subf %305, %308 : vector<16x128xf32>
    %310 = math.exp %309 : vector<16x128xf32>
    %cst_106 = arith.constant dense<0.000000e+00> : vector<16xf32>
    %311 = vector.multi_reduction <add>, %310, %cst_106 [1] : vector<16x128xf32> to vector<16xf32>
    %312 = vector.shape_cast %311 : vector<16xf32> to vector<16x1xf32>
    %313 = math.log %312 : vector<16x1xf32>
    %314 = arith.addf %313, %307 : vector<16x1xf32>
    %315 = vector.broadcast %314 : vector<16x1xf32> to vector<16x128xf32>
    %316 = arith.subf %305, %315 : vector<16x128xf32>
    %c0_107 = arith.constant 0 : index
    %c0_108 = arith.constant 0 : index
    %317 = vector.load %arg4[%c0_107, %c0_108] : memref<16x128xf32, #tpu.memory_space<vmem>>, vector<16x128xf32>
    tpu.vector_store %arg4[%c0_107, %c0_108], %316 {strides = array<i32>} : memref<16x128xf32, #tpu.memory_space<vmem>>, vector<16x128xf32>,
    return
  }
}

</mosaic_0001>

<bundles_post_ra>
// kernel: full_transformer_forward.1
= control target key start
LH: loop header
LB: loop body
LE: loop exit
PB: predicated region body
PF: predicated region fallthrough
CT: control target
= control target key end

     0   :  { %9 = vsyncpa [#allocation3], 0  ;;  %s2597_s0 = inlined_call_operand.hbm [shape: f32[2,8,32], index: 0, kind: input, shape index: {}]   ;;  %s2598_s1 = inlined_call_operand.hbm [shape: f32[2,8,8], index: 1, kind: input, shape index: {}]   ;;  %s2599_s2 = inlined_call_operand.hbm [shape: f32[352,128], index: 2, kind: input, shape index: {}]   ;;  %s2600_s3 = inlined_call_operand.hbm [shape: f32[24,128], index: 3, kind: input, shape index: {}]   ;;  %s2601_s4 = inlined_call_operand.hbm [shape: f32[16,128], index: 4, kind: output, shape index: {}]  }
   0x1   :  { %10 = vsyncpa [#allocation6], 0 }
   0x2   :  { %11 = vsyncpa [#allocation9], 0 }
   0x3   :  { %12 = vsyncpa [#allocation4], 0  ;;  %s30_s17 = sshll.u32 %s2598_s1, 4  ;;  %s2187_s18 = smov [#allocation5]   ;;  %s31_s17 = int_to_ptr.hbm [resolvable:$true] %s30_s17 }
   0x4   :  { %s32_s19 = sshll.u32 %s2187_s18, 4  ;;  %s17_s22 = sshll.u32 %s2597_s0, 4  ;;  %s33_s19 = int_to_ptr.vmem [resolvable:$true] %s32_s19  ;;  %s18_s22 = int_to_ptr.hbm [resolvable:$true] %s17_s22 }
   0x5   :  { %s2188_s23 = smov 128   ;;  %s2189_s24 = smov 8  }
   0x6   :  { %38 = dma.hbm_to_vmem [thread:$0]  %s31_s17, 256, %s33_s19, [#allocation6], %s2188_s23, %s2188_s23, %s2189_s24  }
   0x7   :  { %s2190_s25 = smov [#allocation2]   ;;  %s43_s1 = sshll.u32 %s2599_s2, 4  ;;  %s44_s1 = int_to_ptr.hbm [resolvable:$true] %s43_s1 }
   0x8   :  { %s19_s26 = sshll.u32 %s2190_s25, 4  ;;  %s56_s30 = sshll.u32 %s2600_s3, 4  ;;  %s20_s26 = int_to_ptr.vmem [resolvable:$true] %s19_s26  ;;  %s57_s30 = int_to_ptr.hbm [resolvable:$true] %s56_s30 }
   0x9   :  { %25 = dma.hbm_to_vmem [thread:$0]  %s18_s22, 256, %s20_s26, [#allocation3], %s2188_s23, %s2188_s23, %s2189_s24  }
   0xa   :  { %s2191_s5 = smov [#allocation7]   ;;  %s2192_s7 = smov [#allocation8]  }
   0xb   :  { %s45_s6 = sshll.u32 %s2191_s5, 4  ;;  %s58_s2 = sshll.u32 %s2192_s7, 4  ;;  %s46_s6 = int_to_ptr.vmem [resolvable:$true] %s45_s6  ;;  %s59_s2 = int_to_ptr.vmem [resolvable:$true] %s58_s2 }
   0xc   :  { %51 = dma.hbm_to_vmem [thread:$0]  %s44_s1, 5632, %s46_s6, [#allocation6], %s2188_s23, %s2188_s23, %s2189_s24  }
   0xd   :  { %64 = dma.hbm_to_vmem [thread:$0]  %s57_s30, 384, %s59_s2, [#allocation9], %s2188_s23, %s2188_s23, %s2189_s24  }
   0xe   :  { %2179 = dma.done.wait [#allocation3], 256  }
   0xf   :  { %2180 = vsyncadd [#allocation3], 4294967040 }
  0x10   :  { %2181 = dma.done.wait [#allocation6], 5888  }
  0x11   :  { %2182 = vsyncadd [#allocation6], 4294961408 }
  0x12   :  { %2183 = dma.done.wait [#allocation9], 384  }
  0x13   :  { %2184 = vsyncadd [#allocation9], 4294966912  ;;  %v92_v0 = vld [vmem:[#allocation7 + $0x18] sm:$0xff]  ;;  %v91_v1 = vld [vmem:[#allocation7 + $0x10] sm:$0xff]  ;;  %vm95_vm0 = vcmask 261120   ;;  %s2193_s3 = smov 88  }
  0x14   :  { %114 = vmatpush.msra.mxu0 %v92_v0  ;;  %v90_v2 = vld [vmem:[#allocation7 + $0x8] sm:$0xff]  ;;  %v89_v3 = vld [vmem:[#allocation7] sm:$0xff]  ;;  %s2194_s8 = smov 96   ;;  %s2195_s9 = smov 80   ;;  %vm128_vm1 = vcmask 64512   ;;  %v83_v25 = vld [vmem:[#allocation5] sm:$0xff] }
  0x15   :  { %v2257_v4 = vld [vmem:[#allocation2] sm:$0xff]  ;;  %v2261_v5 = vld [vmem:[#allocation2 + $0x8] sm:$0xff]  ;;  %s2196_s10 = smov 120   ;;  %s2197_s11 = smov 72   ;;  %v1833_v26 = vadd.f32 -1.0, %v83_v25  ;;  %v84_v32 = vld [vmem:[#allocation5 + $0x8] sm:$0xff] }
  0x16   :  { %115 = vmatpush.msra.mxu0 %v91_v1  ;;  %v1952_v6 = vld [vmem:[#allocation8] ss:$0 sm:$0xff]  ;;  %s2198_s12 = smov 112   ;;  %s2199_s13 = smov 104   ;;  %v1834_v33 = vadd.f32 -1.0, %v84_v32  ;;  %vm686_vm2 = vcmask 130048  }
  0x17   :  { %v2315_v27 = vmul.f32 1e+09, %v1833_v26  ;;  %s2200_s14 = smov 56   ;;  %s2201_s15 = smov 64   ;;  %vm689_vm3 = vcmask 195584   ;;  %vm839_vm11 = vcmask 523264  }
  0x18   :  { %116 = vmatpush.msra.mxu0 %v90_v2  ;;  %v2319_v35 = vmul.f32 1e+09, %v1834_v33  ;;  %s2202_s16 = smov 48   ;;  %s2203_s17 = smov 40  }
  0x19   :  { %s2204_s18 = smov 16   ;;  %s2205_s19 = smov 24  }
  0x1a   :  { %117 = vmatpush.msra.mxu0 %v89_v3  ;;  %s2207_s20 = smov [#allocation10]   ;;  %s1818_s26 = sshll.u32 %s2601_s4, 4  ;;  %s1819_s26 = int_to_ptr.hbm [resolvable:$true] %s1818_s26 }
  0x1b   :  { %1835 = vmatmul.msk.f32.vlgmr.msra.gmra.mxu0 %vm95_vm0, %v2257_v4  ;;  %s1816_s21 = sshll.u32 %s2207_s20, 4  ;;  %s1817_s21 = int_to_ptr.vmem [resolvable:$true] %s1816_s21 }
  0x23   :  { %1836 = vmatmul.msk.f32.gmra.mxu0 %vm95_vm0, %v2261_v5 }
  0x98   :  { %v119_v7 = vpop.f32.mrf.mxu0 }
  0x99   :  { %v2265_v8 = vadd.f32 %v1952_v6, %v119_v7 }
  0x9b   :  { %260 = vrot.lane.b32.xlu2 %v2265_v8, %s2193_s3  ;;  %126 = vrot.lane.b32.xlu0 %v2265_v8, %s2194_s8 }
  0xa0   :  { %v122_v9 = vpop.f32.mrf.mxu0 }
  0xa1   :  { %v2271_v10 = vadd.f32 %v1952_v6, %v122_v9 }
  0xa3   :  { %288 = vrot.lane.b32.xlu1 %v2271_v10, %s2193_s3  ;;  %394 = vrot.lane.b32.xlu2 %v2265_v8, %s2195_s9  ;;  %v1927_v47 = vpack.i.bf16 %v2271_v10, %v2265_v8 }
  0xa4   :  { %154 = vrot.lane.b32.xlu0 %v2271_v10, %s2194_s8 }
  0xab   :  { %286 = vrot.lane.b32.xlu1 %v2271_v10, %s2196_s10  ;;  %528 = vrot.lane.b32.xlu2 %v2265_v8, %s2197_s11 }
  0xac   :  { %258 = vrot.lane.b32.xlu0 %v2265_v8, %s2196_s10 }
  0xb3   :  { %392 = vrot.lane.b32.xlu1 %v2265_v8, %s2198_s12  ;;  %420 = vrot.lane.b32.xlu2 %v2271_v10, %s2198_s12 }
  0xb4   :  { %526 = vrot.lane.b32.xlu0 %v2265_v8, %s2199_s13 }
  0xbb   :  { %422 = vrot.lane.b32.xlu1 %v2271_v10, %s2195_s9 }
  0xbc   :  { %556 = vrot.lane.b32.xlu0 %v2271_v10, %s2197_s11 }
  0xc3   :  { %554 = vrot.lane.b32.xlu1 %v2271_v10, %s2199_s13 }
  0xf5   :  { %v261_v11 = vpop.permute.xlu2 %260 }
  0xf6   :  { %1843 = vmatpush.xpose.msk.msra.mxu1 %vm128_vm1, %v261_v11 }
  0xfd   :  { %v395_v15 = vpop.permute.xlu2 %394 }
 0x105   :  { %v529_v18 = vpop.permute.xlu2 %528 }
 0x10d   :  { %v127_v12 = vpop.permute.xlu0 %126  ;;  %v421_v23 = vpop.permute.xlu2 %420 }
 0x10e   :  { %1837 = vmatpush.xpose.msk.msrb.mxu0 %vm128_vm1, %v127_v12 }
 0x111   :  { %1838 = vmatmul.msk.f32.vlgmr.msrb.gmra.mxu0 %vm128_vm1, %v2265_v8 }
 0x115   :  { %v289_v13 = vpop.permute.xlu1 %288 }
 0x116   :  { %v155_v14 = vpop.permute.xlu0 %154 }
 0x117   :  { %1839 = vmatpush.xpose.msk.msra.mxu2 %vm128_vm1, %v155_v14 }
 0x11a   :  { %1840 = vmatmul.msk.f32.vlgmr.msra.gmra.mxu2 %vm128_vm1, %v2271_v10 }
 0x11b   :  { %1845 = vmatpush.xpose.msk.msrb.mxu2 %vm128_vm1, %v289_v13 }
 0x11d   :  { %v287_v16 = vpop.permute.xlu1 %286 }
 0x11e   :  { %v259_v17 = vpop.permute.xlu0 %258 }
 0x11f   :  { %1849 = vmatpush.xpose.msk.msra.mxu2 %vm128_vm1, %v395_v15  ;;  %1844 = vmatmul.msk.f32.vlgmr.msra.gmra.mxu1 %vm128_vm1, %v259_v17 }
 0x122   :  { %1846 = vmatmul.msk.f32.vlgmr.msrb.gmra.mxu2 %vm128_vm1, %v287_v16 }
 0x123   :  { %1855 = vmatpush.xpose.msk.msrb.mxu2 %vm128_vm1, %v529_v18 }
 0x125   :  { %v393_v19 = vpop.permute.xlu1 %392 }
 0x126   :  { %v527_v20 = vpop.permute.xlu0 %526 }
 0x12a   :  { %1850 = vmatmul.msk.f32.vlgmr.msra.gmra.mxu2 %vm128_vm1, %v393_v19 }
 0x12d   :  { %v423_v21 = vpop.permute.xlu1 %422 }
 0x12e   :  { %v557_v22 = vpop.permute.xlu0 %556  ;;  %1851 = vmatpush.xpose.msk.msra.mxu0 %vm128_vm1, %v423_v21 }
 0x131   :  { %1852 = vmatmul.msk.f32.vlgmr.msra.gmra.mxu0 %vm128_vm1, %v421_v23 }
 0x132   :  { %1857 = vmatpush.xpose.msk.msrb.mxu0 %vm128_vm1, %v557_v22  ;;  %1856 = vmatmul.msk.f32.vlgmr.msrb.gmra.mxu2 %vm128_vm1, %v527_v20 }
 0x135   :  { %v555_v24 = vpop.permute.xlu1 %554 }
 0x139   :  { %1858 = vmatmul.msk.f32.vlgmr.msrb.gmra.mxu0 %vm128_vm1, %v555_v24 }
 0x18e   :  { %v150_v28 = vpop.f32.mrf.mxu0 }
 0x18f   :  { %v180_v29 = vmul.f32 0.35355338, %v150_v28 }
 0x191   :  { %v182_v30 = vadd.f32 %v180_v29, %v2315_v27 }
 0x193   :  { %v184_v31 = vsel %vm128_vm1, %v182_v30, -inf }
 0x194   :  { %185 = vmax.xlane.f32.xlu2 %v184_v31 }
 0x19c   :  { %v283_v34 = vpop.f32.mrf.mxu1 }
 0x19d   :  { %v314_v36 = vmul.f32 0.35355338, %v283_v34  ;;  %v177_v37 = vpop.f32.mrf.mxu2 }
 0x19e   :  { %v181_v38 = vmul.f32 0.35355338, %v177_v37 }
 0x19f   :  { %v2322_v39 = vadd.f32 %v314_v36, %v2315_v27 }
 0x1a0   :  { %v183_v40 = vadd.f32 %v181_v38, %v2319_v35 }
 0x1a1   :  { %v318_v41 = vsel %vm128_vm1, %v2322_v39, -inf }
 0x1a2   :  { %319 = vmax.xlane.f32.xlu1 %v318_v41  ;;  %v187_v42 = vsel %vm128_vm1, %v183_v40, -inf }
 0x1a3   :  { %188 = vmax.xlane.f32.xlu0 %v187_v42 }
 0x1a5   :  { %v311_v48 = vpop.f32.mrf.mxu2 }
 0x1a6   :  { %v315_v52 = vmul.f32 0.35355338, %v311_v48 }
 0x1a8   :  { %v317_v54 = vadd.f32 %v315_v52, %v2319_v35 }
 0x1aa   :  { %v321_v57 = vsel %vm128_vm1, %v317_v54, -inf }
 0x1ad   :  { %v417_v55 = vpop.f32.mrf.mxu2 }
 0x1ae   :  { %v445_v43 = vpop.f32.mrf.mxu0  ;;  %v448_v56 = vmul.f32 0.35355338, %v417_v55 }
 0x1af   :  { %v449_v44 = vmul.f32 0.35355338, %v445_v43 }
 0x1b0   :  { %v450_v58 = vadd.f32 %v448_v56, %v2315_v27 }
 0x1b1   :  { %v451_v45 = vadd.f32 %v449_v44, %v2319_v35 }
 0x1b2   :  { %v452_v59 = vsel %vm128_vm1, %v450_v58, -inf }
 0x1b3   :  { %v455_v46 = vsel %vm128_vm1, %v451_v45, -inf }
 0x1b4   :  { %456 = vmax.xlane.f32.xlu1 %v455_v46 }
 0x1b5   :  { %v551_v60 = vpop.f32.mrf.mxu2 }
 0x1b6   :  { %v579_v49 = vpop.f32.mrf.mxu0  ;;  %v582_v61 = vmul.f32 0.35355338, %v551_v60 }
 0x1b7   :  { %1928 = vrot.lane.b32.xlu0 %v1927_v47, %s2200_s14  ;;  %v583_v50 = vmul.f32 0.35355338, %v579_v49 }
 0x1b8   :  { %v2340_v62 = vadd.f32 %v582_v61, %v2315_v27 }
 0x1b9   :  { %v585_v51 = vadd.f32 %v583_v50, %v2319_v35 }
 0x1ba   :  { %v586_v63 = vsel %vm128_vm1, %v2340_v62, -inf }
 0x1bb   :  { %v589_v53 = vsel %vm128_vm1, %v585_v51, -inf }
 0x1bc   :  { %590 = vmax.xlane.f32.xlu2 %v589_v53 }
 0x1c4   :  { %322 = vmax.xlane.f32.xlu2 %v321_v57 }
 0x1cc   :  { %453 = vmax.xlane.f32.xlu2 %v452_v59 }
 0x1e1   :  { %587 = vmax.xlane.f32.xlu0 %v586_v63 }
 0x1e4   :  { %1923 = vrot.lane.b32.xlu2 %v1927_v47, %s2201_s15 }
 0x1ec   :  { %474 = vrot.lane.b32.xlu2 %v2265_v8, %s2202_s16 }
 0x207   :  { %v186_v0 = vpop.xlane.xlu2 %185 }
 0x208   :  { %v190_v1 = vsub.f32 %v182_v30, %v186_v0 }
 0x20a   :  { %v192_v2 = vmul.f32 1.442695, %v190_v1 }
 0x20c   :  { %1969 = vpow2.f32 %v192_v2 }
 0x212   :  { %v2347_v3 = vpop.eup %1969 }
 0x213   :  { %v196_v6 = vsel %vm128_vm1, %v2347_v3, 0.0 }
 0x214   :  { %197 = vadd.xlane.f32.xlu0 %v196_v6 }
 0x215   :  { %v320_v7 = vpop.xlane.xlu1 %319 }
 0x216   :  { %v189_v9 = vpop.xlane.xlu0 %188  ;;  %v324_v31 = vsub.f32 %v2322_v39, %v320_v7 }
 0x217   :  { %v191_v14 = vsub.f32 %v183_v40, %v189_v9 }
 0x218   :  { %v326_v37 = vmul.f32 1.442695, %v324_v31 }
 0x219   :  { %v194_v17 = vmul.f32 1.442695, %v191_v14 }
 0x227   :  { %v457_v11 = vpop.xlane.xlu1 %456 }
 0x228   :  { %v459_v12 = vsub.f32 %v451_v45, %v457_v11  ;;  %608 = vrot.lane.b32.xlu0 %v2265_v8, %s2203_s17 }
 0x229   :  { %v1929_v13 = vpop.permute.xlu0 %1928 }
 0x22a   :  { %v462_v15 = vmul.f32 1.442695, %v459_v12  ;;  %v1931_v16 = vunpack.i.h.bf16 %v1929_v13  ;;  %v1930_v53 = vunpack.i.l.bf16 %v1929_v13 }
 0x22c   :  { %1971 = vpow2.f32 %v462_v15  ;;  %387 = vmatpush.msrb.mxu1 %v1931_v16 }
 0x22d   :  { %1973 = vpow2.f32 %v194_v17 }
 0x22f   :  { %v591_v18 = vpop.xlane.xlu2 %590 }
 0x230   :  { %v593_v19 = vsub.f32 %v585_v51, %v591_v18 }
 0x232   :  { %v2353_v20 = vpop.eup %1971  ;;  %v596_v21 = vmul.f32 1.442695, %v593_v19 }
 0x233   :  { %v467_v22 = vsel %vm128_vm1, %v2353_v20, 0.0  ;;  %v1974_v8 = vpop.eup %1973 }
 0x234   :  { %1975 = vpow2.f32 %v596_v21  ;;  %468 = vadd.xlane.f32.xlu1 %v467_v22  ;;  %v199_v29 = vsel %vm128_vm1, %v1974_v8, 0.0 }
 0x237   :  { %v323_v23 = vpop.xlane.xlu2 %322 }
 0x238   :  { %v325_v24 = vsub.f32 %v317_v54, %v323_v23 }
 0x23a   :  { %v2357_v25 = vpop.eup %1975  ;;  %v328_v26 = vmul.f32 1.442695, %v325_v24 }
 0x23b   :  { %v601_v28 = vsel %vm128_vm1, %v2357_v25, 0.0 }
 0x23c   :  { %1977 = vpow2.f32 %v328_v26  ;;  %602 = vadd.xlane.f32.xlu2 %v601_v28  ;;  %200 = vadd.xlane.f32.xlu1 %v199_v29  ;;  %v694_v26 = vld [vmem:[#allocation7 + $0x30] sm:$0xff]  ;;  %v693_v28 = vld [vmem:[#allocation7 + $0x28] sm:$0xff]  ;;  %v692_v29 = vld [vmem:[#allocation7 + $0x20] sm:$0xff] }
 0x23f   :  { %v454_v30 = vpop.xlane.xlu2 %453 }
 0x240   :  { %v458_v32 = vsub.f32 %v450_v58, %v454_v30 }
 0x242   :  { %v1978_v33 = vpop.eup %1977  ;;  %v460_v34 = vmul.f32 1.442695, %v458_v32 }
 0x243   :  { %v333_v36 = vsel %vm128_vm1, %v1978_v33, 0.0 }
 0x244   :  { %1979 = vpow2.f32 %v460_v34  ;;  %334 = vadd.xlane.f32.xlu1 %v333_v36 }
 0x245   :  { %1981 = vpow2.f32 %v326_v37 }
 0x247   :  { %v1924_v38 = vpop.permute.xlu2 %1923 }
 0x248   :  { %v1925_v40 = vunpack.i.l.bf16 %v1924_v38  ;;  %v1926_v41 = vunpack.i.h.bf16 %v1924_v38 }
 0x24a   :  { %v1980_v42 = vpop.eup %1979  ;;  %227 = vmatpush.msra.mxu3 %v1925_v40 }
 0x24b   :  { %v464_v43 = vsel %vm128_vm1, %v1980_v42, 0.0  ;;  %v1982_v44 = vpop.eup %1981 }
 0x24c   :  { %253 = vmatpush.msrb.mxu3 %v1926_v41  ;;  %465 = vadd.xlane.f32.xlu1 %v464_v43  ;;  %v330_v39 = vsel %vm128_vm1, %v1982_v44, 0.0 }
 0x24f   :  { %v475_v59 = vpop.permute.xlu2 %474 }
 0x252   :  { %331 = vadd.xlane.f32.xlu0 %v330_v39 }
 0x254   :  { %v588_v45 = vpop.xlane.xlu0 %587 }
 0x255   :  { %v592_v46 = vsub.f32 %v2340_v62, %v588_v45 }
 0x257   :  { %v594_v47 = vmul.f32 1.442695, %v592_v46 }
 0x259   :  { %1983 = vpow2.f32 %v594_v47 }
 0x25f   :  { %v1984_v48 = vpop.eup %1983 }
 0x260   :  { %v598_v49 = vsel %vm128_vm1, %v1984_v48, 0.0 }
 0x261   :  { %599 = vadd.xlane.f32.xlu1 %v598_v49 }
 0x266   :  { %634 = vrot.lane.b32.xlu0 %v2271_v10, %s2203_s17 }
 0x27a   :  { %500 = vrot.lane.b32.xlu1 %v2271_v10, %s2202_s16 }
 0x287   :  { %v198_v50 = vpop.xlane.xlu0 %197 }
 0x288   :  { %1985 = vrcp.f32 %v198_v50 }
 0x28e   :  { %v1986_v51 = vpop.eup %1985 }
 0x28f   :  { %v204_v52 = vmul.f32 %v1986_v51, %v2347_v3 }
 0x291   :  { %1841 = vmatmul.msk.f32.vlgmr.msra.gmra.mxu3 %vm128_vm1, %v204_v52 }
 0x292   :  { %361 = vmatpush.msra.mxu3 %v1930_v53 }
 0x29a   :  { %v609_v10 = vpop.permute.xlu0 %608 }
 0x2a7   :  { %v469_v54 = vpop.xlane.xlu1 %468 }
 0x2af   :  { %v201_v55 = vpop.xlane.xlu1 %200  ;;  %v603_v11 = vpop.xlane.xlu2 %602 }
 0x2b0   :  { %1987 = vrcp.f32 %v201_v55  ;;  %v2206_v55 = vmov 32.0  }
 0x2b6   :  { %v1988_v56 = vpop.eup %1987 }
 0x2b7   :  { %v335_v57 = vpop.xlane.xlu1 %334  ;;  %v205_v58 = vmul.f32 %v1988_v56, %v1974_v8 }
 0x2b8   :  { %1989 = vrcp.f32 %v335_v57 }
 0x2b9   :  { %1842 = vmatmul.msk.f32.vlgmr.msrb.gmra.mxu3 %vm128_vm1, %v205_v58 }
 0x2ba   :  { %495 = vmatpush.msrb.mxu3 %v475_v59 }
 0x2be   :  { %v1990_v60 = vpop.eup %1989 }
 0x2bf   :  { %v339_v61 = vmul.f32 %v1990_v60, %v1978_v33  ;;  %v466_v63 = vpop.xlane.xlu1 %465  ;;  %v794_v60 = vld [vmem:[#allocation7 + $0x50] sm:$0xff] }
 0x2c1   :  { %1848 = vmatmul.msk.f32.vlgmr.msrb.gmra.mxu1 %vm128_vm1, %v339_v61 }
 0x2c5   :  { %v332_v62 = vpop.xlane.xlu0 %331 }
 0x2c6   :  { %1991 = vrcp.f32 %v332_v62  ;;  %v793_v62 = vld [vmem:[#allocation7 + $0x48] sm:$0xff] }
 0x2c7   :  { %1993 = vrcp.f32 %v466_v63 }
 0x2cc   :  { %v1992_v0 = vpop.eup %1991 }
 0x2cd   :  { %v338_v1 = vmul.f32 %v1992_v0, %v1982_v44  ;;  %v1994_v2 = vpop.eup %1993  ;;  %v1953_v44 = vld [vmem:[#allocation8 + $0x1] ss:$0 sm:$0xff] }
 0x2ce   :  { %v472_v6 = vmul.f32 %v1994_v2, %v1980_v42 }
 0x2cf   :  { %1847 = vmatmul.msk.f32.vlgmr.msra.gmra.mxu3 %vm128_vm1, %v338_v1  ;;  %v792_v1 = vld [vmem:[#allocation7 + $0x40] sm:$0xff] }
 0x2d0   :  { %629 = vmatpush.msra.mxu3 %v609_v10 }
 0x2d4   :  { %v600_v3 = vpop.xlane.xlu1 %599 }
 0x2d5   :  { %1995 = vrcp.f32 %v600_v3 }
 0x2d6   :  { %1997 = vrcp.f32 %v469_v54 }
 0x2d7   :  { %1853 = vmatmul.msk.f32.vlgmr.msrb.gmra.mxu3 %vm128_vm1, %v472_v6  ;;  %1999 = vrcp.f32 %v603_v11 }
 0x2d8   :  { %v635_v15 = vpop.permute.xlu0 %634  ;;  %2001 = vrcp.f32 %v2206_v55 }
 0x2db   :  { %v1996_v7 = vpop.eup %1995 }
 0x2dc   :  { %v606_v9 = vmul.f32 %v1996_v7, %v1984_v48  ;;  %v1998_v12 = vpop.eup %1997 }
 0x2dd   :  { %v473_v13 = vmul.f32 %v1998_v12, %v2353_v20  ;;  %v2000_v16 = vpop.eup %1999 }
 0x2de   :  { %v607_v17 = vmul.f32 %v2000_v16, %v2357_v25  ;;  %v695_v25 = vld [vmem:[#allocation7 + $0x38] sm:$0xff]  ;;  %v2002_v56 = vpop.eup %2001 }
 0x2df   :  { %1859 = vmatmul.msk.f32.vlgmr.msra.gmra.mxu3 %vm128_vm1, %v606_v9  ;;  %716 = vmatpush.msra.mxu2 %v695_v25  ;;  %v738_v57 = vmul.f32 32.0, %v2002_v56  ;;  %vm742_vm4 = vweird.f32 %v2002_v56  ;;  %v804_v16 = vld [vmem:[#allocation7 + $0x98] sm:$0xff] }
 0x2e0   :  { %854 = vmatpush.msrb.mxu3 %v804_v16 }
 0x2e1   :  { %717 = vmatpush.msra.mxu2 %v694_v26  ;;  %v739_v58 = vsub.f32 1.0, %v738_v57  ;;  %v1957_v57 = vld [vmem:[#allocation8 + $0x3] ss:$0 sm:$0xff] }
 0x2e3   :  { %718 = vmatpush.msra.mxu2 %v693_v28  ;;  %v740_v59 = vmul.f32 %v2002_v56, %v739_v58  ;;  %v800_v28 = vld [vmem:[#allocation7 + $0x78] sm:$0xff] }
 0x2e5   :  { %719 = vmatpush.msra.mxu2 %v692_v29  ;;  %v741_v10 = vadd.f32 %v2002_v56, %v740_v59 }
 0x2e7   :  { %v2413_v61 = vsel %vm742_vm4, %v2002_v56, %v741_v10 }
 0x2ec   :  { %v501_v14 = vpop.permute.xlu1 %500 }
 0x2ed   :  { %521 = vmatpush.msra.mxu1 %v501_v14 }
 0x2ee   :  { %1854 = vmatmul.msk.f32.vlgmr.msra.gmra.mxu1 %vm128_vm1, %v473_v13 }
 0x2ef   :  { %655 = vmatpush.msrb.mxu1 %v635_v15 }
 0x2f6   :  { %1860 = vmatmul.msk.f32.vlgmr.msrb.gmra.mxu1 %vm128_vm1, %v607_v17  ;;  %v803_v17 = vld [vmem:[#allocation7 + $0x90] sm:$0xff] }
 0x2f7   :  { %855 = vmatpush.msrb.mxu3 %v803_v17 }
 0x314   :  { %v229_v18 = vpop.f32.mrf.mxu3 }
 0x33c   :  { %v255_v19 = vpop.f32.mrf.mxu3 }
 0x33e   :  { %v389_v20 = vpop.f32.mrf.mxu1 }
 0x352   :  { %v363_v21 = vpop.f32.mrf.mxu3 }
 0x353   :  { %662 = vrot.lane.b32.xlu0 %v363_v21, %s2189_s24 }
 0x35a   :  { %v497_v22 = vpop.f32.mrf.mxu3 }
 0x35b   :  { %670 = vrot.lane.b32.xlu0 %v497_v22, %s2204_s18 }
 0x362   :  { %v631_v23 = vpop.f32.mrf.mxu3 }
 0x363   :  { %664 = vrot.lane.b32.xlu0 %v389_v20, %s2189_s24  ;;  %678 = vrot.lane.b32.xlu1 %v631_v23, %s2205_s19  ;;  %v802_v20 = vld [vmem:[#allocation7 + $0x88] sm:$0xff] }
 0x364   :  { %856 = vmatpush.msrb.mxu3 %v802_v20 }
 0x36b   :  { %v523_v8 = vpop.f32.mrf.mxu1 }
 0x36c   :  { %672 = vrot.lane.b32.xlu1 %v523_v8, %s2204_s18 }
 0x373   :  { %v657_v24 = vpop.f32.mrf.mxu1 }
 0x374   :  { %680 = vrot.lane.b32.xlu0 %v657_v24, %s2205_s19  ;;  %v801_v24 = vld [vmem:[#allocation7 + $0x80] sm:$0xff] }
 0x375   :  { %857 = vmatpush.msrb.mxu3 %v801_v24 }
 0x377   :  { %858 = vmatpush.msrb.mxu3 %v800_v28 }
 0x3c5   :  { %v663_v30 = vpop.permute.xlu0 %662 }
 0x3c6   :  { %v684_v32 = vsel %vm128_vm1, %v229_v18, %v663_v30  ;;  %v1954_v30 = vld [vmem:[#allocation8 + $0x4] ss:$0 sm:$0xff] }
 0x3cd   :  { %v671_v31 = vpop.permute.xlu0 %670 }
 0x3ce   :  { %v687_v33 = vsel %vm686_vm2, %v684_v32, %v671_v31 }
 0x3d5   :  { %v679_v34 = vpop.permute.xlu1 %678  ;;  %v665_v37 = vpop.permute.xlu0 %664 }
 0x3d6   :  { %v690_v36 = vsel %vm689_vm3, %v687_v33, %v679_v34  ;;  %v685_v40 = vsel %vm128_vm1, %v255_v19, %v665_v37  ;;  %v1955_v33 = vld [vmem:[#allocation8 + $0x5] ss:$0 sm:$0xff] }
 0x3d7   :  { %1861 = vmatmul.msk.f32.vlgmr.msra.gmra.mxu2 %vm95_vm0, %v690_v36 }
 0x3de   :  { %v673_v38 = vpop.permute.xlu1 %672 }
 0x3df   :  { %v688_v41 = vsel %vm686_vm2, %v685_v40, %v673_v38 }
 0x3e6   :  { %v681_v42 = vpop.permute.xlu0 %680 }
 0x3e7   :  { %v691_v43 = vsel %vm689_vm3, %v688_v41, %v681_v42 }
 0x3e8   :  { %1862 = vmatmul.msk.f32.gmra.mxu2 %vm95_vm0, %v691_v43 }
 0x45a   :  { %v721_v39 = vpop.f32.mrf.mxu2 }
 0x45b   :  { %v722_v45 = vadd.f32 %v1953_v44, %v721_v39 }
 0x45d   :  { %v2398_v46 = vadd.f32 %v722_v45, %v2257_v4 }
 0x45f   :  { %v731_v47 = vsel %vm95_vm0, %v2398_v46, 0.0  ;;  %v746_v48 = vmul.f32 %v2398_v46, %v2398_v46 }
 0x460   :  { %732 = vadd.xlane.f32.xlu2 %v731_v47 }
 0x461   :  { %v748_v49 = vsel %vm95_vm0, %v746_v48, 0.0  ;;  %v799_v48 = vld [vmem:[#allocation7 + $0x70] sm:$0xff] }
 0x462   :  { %749 = vadd.xlane.f32.xlu1 %v748_v49  ;;  %859 = vmatpush.msrb.mxu3 %v799_v48  ;;  %v798_v49 = vld [vmem:[#allocation7 + $0x68] sm:$0xff] }
 0x464   :  { %860 = vmatpush.msrb.mxu3 %v798_v49 }
 0x46b   :  { %v724_v50 = vpop.f32.mrf.mxu2 }
 0x46c   :  { %v725_v51 = vadd.f32 %v1953_v44, %v724_v50  ;;  %v797_v50 = vld [vmem:[#allocation7 + $0x60] sm:$0xff] }
 0x46d   :  { %861 = vmatpush.msrb.mxu3 %v797_v50 }
 0x46e   :  { %v2406_v52 = vadd.f32 %v725_v51, %v2261_v5  ;;  %v795_v5 = vld [vmem:[#allocation7 + $0x58] sm:$0xff]  ;;  %v1956_v51 = vld [vmem:[#allocation8 + $0x2] ss:$0 sm:$0xff] }
 0x46f   :  { %825 = vmatpush.msra.mxu0 %v795_v5 }
 0x470   :  { %v734_v53 = vsel %vm95_vm0, %v2406_v52, 0.0  ;;  %v747_v4 = vmul.f32 %v2406_v52, %v2406_v52 }
 0x471   :  { %735 = vadd.xlane.f32.xlu0 %v734_v53  ;;  %826 = vmatpush.msra.mxu0 %v794_v60 }
 0x472   :  { %v751_v54 = vsel %vm95_vm0, %v747_v4, 0.0 }
 0x473   :  { %752 = vadd.xlane.f32.xlu2 %v751_v54  ;;  %827 = vmatpush.msra.mxu0 %v793_v62 }
 0x475   :  { %828 = vmatpush.msra.mxu0 %v792_v1 }
 0x4d3   :  { %v733_v63 = vpop.xlane.xlu2 %732 }
 0x4d4   :  { %v744_v0 = vmul.f32 %v2413_v61, %v733_v63 }
 0x4d5   :  { %v750_v2 = vpop.xlane.xlu1 %749 }
 0x4d6   :  { %v756_v3 = vmul.f32 %v744_v0, %v744_v0  ;;  %v754_v6 = vmul.f32 %v750_v2, %v2413_v61  ;;  %v760_v29 = vsub.f32 %v2398_v46, %v744_v0 }
 0x4d8   :  { %v758_v7 = vsub.f32 %v754_v6, %v756_v3 }
 0x4da   :  { %v762_v9 = vadd.f32 1e-05, %v758_v7 }
 0x4dc   :  { %2003 = vrsqrt.f32 %v762_v9  ;;  %vm770_vm6 = vweird.f32 %v762_v9 }
 0x4e2   :  { %v2004_v11 = vpop.eup %2003 }
 0x4e3   :  { %v765_v12 = vmul.f32 %v2004_v11, %v762_v9  ;;  %vm771_vm5 = vweird.f32 %v2004_v11  ;;  %v930_v9 = vld [vmem:[#allocation7 + $0xb8] sm:$0xff] }
 0x4e4   :  { %v736_v13 = vpop.xlane.xlu0 %735  ;;  %vm772_vm7 = vmor %vm770_vm6, %vm771_vm5  ;;  %951 = vmatpush.msra.mxu1 %v930_v9 }
 0x4e5   :  { %v766_v14 = vmul.f32 %v2004_v11, %v765_v12  ;;  %v745_v15 = vmul.f32 %v2413_v61, %v736_v13  ;;  %v928_v13 = vld [vmem:[#allocation7 + $0xa8] sm:$0xff] }
 0x4e6   :  { %v753_v18 = vpop.xlane.xlu2 %752 }
 0x4e7   :  { %v767_v19 = vmul.f32 0.5, %v766_v14  ;;  %v757_v21 = vmul.f32 %v745_v15, %v745_v15  ;;  %v755_v22 = vmul.f32 %v753_v18, %v2413_v61  ;;  %v761_v44 = vsub.f32 %v2406_v52, %v745_v15  ;;  %v927_v14 = vld [vmem:[#allocation7 + $0xa0] sm:$0xff] }
 0x4e9   :  { %v768_v23 = vsub.f32 1.5, %v767_v19  ;;  %v759_v8 = vsub.f32 %v755_v22, %v757_v21 }
 0x4eb   :  { %v769_v25 = vmul.f32 %v2004_v11, %v768_v23  ;;  %v763_v26 = vadd.f32 1e-05, %v759_v8 }
 0x4ed   :  { %v773_v31 = vsel %vm772_vm7, %v2004_v11, %v769_v25  ;;  %2005 = vrsqrt.f32 %v763_v26  ;;  %vm780_vm9 = vweird.f32 %v763_v26  ;;  %v929_v11 = vld [vmem:[#allocation7 + $0xb0] sm:$0xff] }
 0x4ee   :  { %v784_v32 = vmul.f32 %v773_v31, %v760_v29  ;;  %952 = vmatpush.msra.mxu1 %v929_v11 }
 0x4f0   :  { %v787_v34 = vmul.f32 %v1954_v30, %v784_v32  ;;  %953 = vmatpush.msra.mxu1 %v928_v13 }
 0x4f2   :  { %v790_v36 = vadd.f32 %v1955_v33, %v787_v34  ;;  %954 = vmatpush.msra.mxu1 %v927_v14  ;;  %v1958_v34 = vld [vmem:[#allocation8 + $0x6] ss:$0 sm:$0xff] }
 0x4f3   :  { %v2006_v37 = vpop.eup %2005 }
 0x4f4   :  { %v775_v38 = vmul.f32 %v2006_v37, %v763_v26  ;;  %1863 = vmatmul.msk.f32.vlgmr.msra.gmra.mxu0 %vm95_vm0, %v790_v36  ;;  %vm781_vm8 = vweird.f32 %v2006_v37 }
 0x4f5   :  { %vm782_vm10 = vmor %vm780_vm9, %vm781_vm8 }
 0x4f6   :  { %v776_v40 = vmul.f32 %v2006_v37, %v775_v38  ;;  %v1959_v38 = vld [vmem:[#allocation8 + $0x7] ss:$0 sm:$0xff] }
 0x4f8   :  { %v777_v41 = vmul.f32 0.5, %v776_v40 }
 0x4fa   :  { %v778_v42 = vsub.f32 1.5, %v777_v41 }
 0x4fc   :  { %v779_v43 = vmul.f32 %v2006_v37, %v778_v42 }
 0x4fe   :  { %v783_v39 = vsel %vm782_vm10, %v2006_v37, %v779_v43 }
 0x4ff   :  { %v785_v45 = vmul.f32 %v783_v39, %v761_v44 }
 0x501   :  { %v788_v46 = vmul.f32 %v1954_v30, %v785_v45 }
 0x503   :  { %v791_v47 = vadd.f32 %v1955_v33, %v788_v46 }
 0x505   :  { %1864 = vmatmul.msk.f32.gmra.mxu0 %vm95_vm0, %v791_v47 }
 0x571   :  { %v830_v53 = vpop.f32.mrf.mxu0 }
 0x572   :  { %v831_v4 = vadd.f32 %v1956_v51, %v830_v53  ;;  %v1960_v53 = vld [vmem:[#allocation8 + $0x8] ss:$0 sm:$0xff] }
 0x574   :  { %v836_v54 = vmax.f32 %v831_v4, 0.0 }
 0x576   :  { %1865 = vmatmul.msk.f32.vlgmr.msrb.gmra.mxu3 %vm839_vm11, %v836_v54 }
 0x582   :  { %v833_v52 = vpop.f32.mrf.mxu0 }
 0x583   :  { %v834_v55 = vadd.f32 %v1956_v51, %v833_v52 }
 0x585   :  { %v837_v56 = vmax.f32 %v834_v55, 0.0 }
 0x587   :  { %1866 = vmatmul.msk.f32.gmra.mxu3 %vm839_vm11, %v837_v56 }
 0x5f9   :  { %v863_v58 = vpop.f32.mrf.mxu3 }
 0x5fa   :  { %v864_v59 = vadd.f32 %v1957_v57, %v863_v58 }
 0x5fc   :  { %v871_v10 = vadd.f32 %v864_v59, %v790_v36 }
 0x5fe   :  { %v873_v5 = vsel %vm95_vm0, %v871_v10, 0.0  ;;  %v881_v60 = vmul.f32 %v871_v10, %v871_v10 }
 0x5ff   :  { %874 = vadd.xlane.f32.xlu2 %v873_v5 }
 0x600   :  { %v883_v62 = vsel %vm95_vm0, %v881_v60, 0.0 }
 0x607   :  { %884 = vadd.xlane.f32.xlu2 %v883_v62 }
 0x60a   :  { %v866_v63 = vpop.f32.mrf.mxu3 }
 0x60b   :  { %v867_v0 = vadd.f32 %v1957_v57, %v866_v63 }
 0x60d   :  { %v872_v1 = vadd.f32 %v867_v0, %v791_v47 }
 0x60f   :  { %v876_v2 = vsel %vm95_vm0, %v872_v1, 0.0  ;;  %v882_v3 = vmul.f32 %v872_v1, %v872_v1 }
 0x610   :  { %877 = vadd.xlane.f32.xlu2 %v876_v2 }
 0x611   :  { %v886_v6 = vsel %vm95_vm0, %v882_v3, 0.0 }
 0x618   :  { %887 = vadd.xlane.f32.xlu2 %v886_v6 }
 0x672   :  { %v875_v7 = vpop.xlane.xlu2 %874 }
 0x673   :  { %v879_v12 = vmul.f32 %v875_v7, %v2413_v61 }
 0x675   :  { %v891_v16 = vmul.f32 %v879_v12, %v879_v12  ;;  %v895_v33 = vsub.f32 %v871_v10, %v879_v12 }
 0x67a   :  { %v885_v15 = vpop.xlane.xlu2 %884 }
 0x67b   :  { %v889_v17 = vmul.f32 %v885_v15, %v2413_v61 }
 0x67d   :  { %v893_v18 = vsub.f32 %v889_v17, %v891_v16 }
 0x67f   :  { %v897_v19 = vadd.f32 1e-05, %v893_v18 }
 0x681   :  { %2007 = vrsqrt.f32 %v897_v19  ;;  %vm905_vm13 = vweird.f32 %v897_v19 }
 0x683   :  { %v878_v21 = vpop.xlane.xlu2 %877 }
 0x684   :  { %v880_v23 = vmul.f32 %v878_v21, %v2413_v61 }
 0x686   :  { %v892_v26 = vmul.f32 %v880_v23, %v880_v23  ;;  %v896_v47 = vsub.f32 %v872_v1, %v880_v23 }
 0x687   :  { %v2008_v22 = vpop.eup %2007 }
 0x688   :  { %v900_v20 = vmul.f32 %v2008_v22, %v897_v19  ;;  %vm906_vm12 = vweird.f32 %v2008_v22 }
 0x689   :  { %vm907_vm14 = vmor %vm905_vm13, %vm906_vm12 }
 0x68a   :  { %v901_v8 = vmul.f32 %v2008_v22, %v900_v20 }
 0x68b   :  { %v888_v24 = vpop.xlane.xlu2 %887 }
 0x68c   :  { %v902_v25 = vmul.f32 0.5, %v901_v8  ;;  %v890_v28 = vmul.f32 %v888_v24, %v2413_v61 }
 0x68e   :  { %v903_v29 = vsub.f32 1.5, %v902_v25  ;;  %v894_v30 = vsub.f32 %v890_v28, %v892_v26 }
 0x690   :  { %v904_v31 = vmul.f32 %v2008_v22, %v903_v29  ;;  %v898_v32 = vadd.f32 1e-05, %v894_v30 }
 0x692   :  { %v908_v36 = vsel %vm907_vm14, %v2008_v22, %v904_v31  ;;  %2009 = vrsqrt.f32 %v898_v32  ;;  %vm915_vm4 = vweird.f32 %v898_v32 }
 0x693   :  { %v919_v37 = vmul.f32 %v908_v36, %v895_v33 }
 0x695   :  { %v922_v40 = vmul.f32 %v1958_v34, %v919_v37 }
 0x697   :  { %v2433_v41 = vadd.f32 %v1959_v38, %v922_v40 }
 0x698   :  { %v2010_v42 = vpop.eup %2009 }
 0x699   :  { %v910_v43 = vmul.f32 %v2010_v42, %v898_v32  ;;  %1867 = vmatmul.msk.f32.vlgmr.msra.gmra.mxu1 %vm95_vm0, %v2433_v41  ;;  %vm916_vm15 = vweird.f32 %v2010_v42 }
 0x69a   :  { %vm917_vm5 = vmor %vm915_vm4, %vm916_vm15 }
 0x69b   :  { %v911_v44 = vmul.f32 %v2010_v42, %v910_v43 }
 0x69d   :  { %v912_v39 = vmul.f32 0.5, %v911_v44 }
 0x69f   :  { %v913_v45 = vsub.f32 1.5, %v912_v39 }
 0x6a1   :  { %v914_v46 = vmul.f32 %v2010_v42, %v913_v45 }
 0x6a3   :  { %v918_v48 = vsel %vm917_vm5, %v2010_v42, %v914_v46 }
 0x6a4   :  { %v920_v49 = vmul.f32 %v918_v48, %v896_v47 }
 0x6a6   :  { %v923_v50 = vmul.f32 %v1958_v34, %v920_v49 }
 0x6a8   :  { %v2437_v51 = vadd.f32 %v1959_v38, %v923_v50 }
 0x6aa   :  { %1868 = vmatmul.msk.f32.gmra.mxu1 %vm95_vm0, %v2437_v51 }
 0x716   :  { %v956_v4 = vpop.f32.mrf.mxu1 }
 0x717   :  { %v2441_v54 = vadd.f32 %v1960_v53, %v956_v4 }
 0x719   :  { %963 = vrot.lane.b32.xlu1 %v2441_v54, %s2194_s8 }
 0x721   :  { %1096 = vrot.lane.b32.xlu1 %v2441_v54, %s2193_s3 }
 0x727   :  { %v959_v52 = vpop.f32.mrf.mxu1 }
 0x728   :  { %v2447_v55 = vadd.f32 %v1960_v53, %v959_v52 }
 0x72a   :  { %1256 = vrot.lane.b32.xlu1 %v2447_v55, %s2198_s12  ;;  %1124 = vrot.lane.b32.xlu2 %v2447_v55, %s2193_s3  ;;  %v1932_v44 = vpack.i.bf16 %v2447_v55, %v2441_v54 }
 0x72b   :  { %990 = vrot.lane.b32.xlu0 %v2447_v55, %s2194_s8 }
 0x732   :  { %1392 = vrot.lane.b32.xlu1 %v2447_v55, %s2197_s11  ;;  %1094 = vrot.lane.b32.xlu2 %v2441_v54, %s2196_s10 }
 0x733   :  { %1122 = vrot.lane.b32.xlu0 %v2447_v55, %s2196_s10 }
 0x73a   :  { %1362 = vrot.lane.b32.xlu1 %v2441_v54, %s2199_s13  ;;  %1230 = vrot.lane.b32.xlu2 %v2441_v54, %s2195_s9 }
 0x73b   :  { %1258 = vrot.lane.b32.xlu0 %v2447_v55, %s2195_s9 }
 0x742   :  { %1390 = vrot.lane.b32.xlu2 %v2447_v55, %s2199_s13 }
 0x743   :  { %1228 = vrot.lane.b32.xlu0 %v2441_v54, %s2198_s12 }
 0x74b   :  { %1364 = vrot.lane.b32.xlu0 %v2441_v54, %s2197_s11 }
 0x784   :  { %v1125_v56 = vpop.permute.xlu2 %1124 }
 0x785   :  { %1877 = vmatpush.xpose.msk.msra.mxu3 %vm128_vm1, %v1125_v56 }
 0x78b   :  { %v964_v57 = vpop.permute.xlu1 %963 }
 0x78c   :  { %1869 = vmatpush.xpose.msk.msrb.mxu2 %vm128_vm1, %v964_v57  ;;  %v1095_v58 = vpop.permute.xlu2 %1094 }
 0x78f   :  { %1870 = vmatmul.msk.f32.vlgmr.msrb.gmra.mxu2 %vm128_vm1, %v2441_v54 }
 0x793   :  { %v1097_v59 = vpop.permute.xlu1 %1096 }
 0x794   :  { %v1231_v5 = vpop.permute.xlu2 %1230 }
 0x79c   :  { %v1257_v60 = vpop.permute.xlu1 %1256  ;;  %v1391_v2 = vpop.permute.xlu2 %1390 }
 0x79d   :  { %v991_v10 = vpop.permute.xlu0 %990 }
 0x79e   :  { %1871 = vmatpush.xpose.msk.msrb.mxu0 %vm128_vm1, %v991_v10 }
 0x7a1   :  { %1872 = vmatmul.msk.f32.vlgmr.msrb.gmra.mxu0 %vm128_vm1, %v2447_v55 }
 0x7a2   :  { %1875 = vmatpush.xpose.msk.msra.mxu0 %vm128_vm1, %v1097_v59 }
 0x7a4   :  { %v1393_v0 = vpop.permute.xlu1 %1392 }
 0x7a5   :  { %v1123_v62 = vpop.permute.xlu0 %1122 }
 0x7a6   :  { %1881 = vmatpush.xpose.msk.msrb.mxu0 %vm128_vm1, %v1231_v5  ;;  %1878 = vmatmul.msk.f32.vlgmr.msra.gmra.mxu3 %vm128_vm1, %v1123_v62 }
 0x7a9   :  { %1876 = vmatmul.msk.f32.vlgmr.msra.gmra.mxu0 %vm128_vm1, %v1095_v58 }
 0x7ac   :  { %v1363_v6 = vpop.permute.xlu1 %1362 }
 0x7ad   :  { %v1259_v63 = vpop.permute.xlu0 %1258 }
 0x7ae   :  { %1883 = vmatpush.xpose.msk.msrb.mxu3 %vm128_vm1, %v1259_v63 }
 0x7b1   :  { %1884 = vmatmul.msk.f32.vlgmr.msrb.gmra.mxu3 %vm128_vm1, %v1257_v60 }
 0x7b2   :  { %1889 = vmatpush.xpose.msk.msra.mxu3 %vm128_vm1, %v1393_v0 }
 0x7b5   :  { %v1229_v1 = vpop.permute.xlu0 %1228 }
 0x7b6   :  { %1882 = vmatmul.msk.f32.vlgmr.msrb.gmra.mxu0 %vm128_vm1, %v1229_v1 }
 0x7b9   :  { %1890 = vmatmul.msk.f32.vlgmr.msra.gmra.mxu3 %vm128_vm1, %v1391_v2 }
 0x7bd   :  { %v1365_v3 = vpop.permute.xlu0 %1364 }
 0x7be   :  { %1887 = vmatpush.xpose.msk.msra.mxu0 %vm128_vm1, %v1365_v3 }
 0x7c1   :  { %1888 = vmatmul.msk.f32.vlgmr.msra.gmra.mxu0 %vm128_vm1, %v1363_v6 }
 0x812   :  { %v986_v7 = vpop.f32.mrf.mxu2 }
 0x813   :  { %v1016_v9 = vmul.f32 0.35355338, %v986_v7 }
 0x815   :  { %v1018_v11 = vadd.f32 %v1016_v9, %v2315_v27 }
 0x817   :  { %v1020_v12 = vsel %vm128_vm1, %v1018_v11, -inf }
 0x818   :  { %1021 = vmax.xlane.f32.xlu2 %v1020_v12 }
 0x81e   :  { %v1013_v13 = vpop.f32.mrf.mxu0 }
 0x81f   :  { %v1017_v14 = vmul.f32 0.35355338, %v1013_v13 }
 0x821   :  { %v1019_v15 = vadd.f32 %v1017_v14, %v2319_v35 }
 0x823   :  { %v1023_v16 = vsel %vm128_vm1, %v1019_v15, -inf }
 0x824   :  { %1024 = vmax.xlane.f32.xlu0 %v1023_v16 }
 0x826   :  { %v1119_v17 = vpop.f32.mrf.mxu0 }
 0x827   :  { %v1150_v18 = vmul.f32 0.35355338, %v1119_v17 }
 0x829   :  { %v1147_v19 = vpop.f32.mrf.mxu3  ;;  %v1152_v21 = vadd.f32 %v1150_v18, %v2315_v27 }
 0x82a   :  { %v1151_v22 = vmul.f32 0.35355338, %v1147_v19 }
 0x82b   :  { %v1154_v20 = vsel %vm128_vm1, %v1152_v21, -inf }
 0x82c   :  { %1155 = vmax.xlane.f32.xlu1 %v1154_v20  ;;  %v1153_v23 = vadd.f32 %v1151_v22, %v2319_v35 }
 0x82e   :  { %v1157_v8 = vsel %vm128_vm1, %v1153_v23, -inf }
 0x82f   :  { %1158 = vmax.xlane.f32.xlu2 %v1157_v8 }
 0x833   :  { %v1253_v24 = vpop.f32.mrf.mxu0 }
 0x834   :  { %v1284_v25 = vmul.f32 0.35355338, %v1253_v24  ;;  %v1281_v26 = vpop.f32.mrf.mxu3 }
 0x835   :  { %v1285_v28 = vmul.f32 0.35355338, %v1281_v26 }
 0x836   :  { %v1286_v29 = vadd.f32 %v1284_v25, %v2315_v27 }
 0x837   :  { %v1287_v30 = vadd.f32 %v1285_v28, %v2319_v35 }
 0x838   :  { %v1288_v31 = vsel %vm128_vm1, %v1286_v29, -inf }
 0x839   :  { %1289 = vmax.xlane.f32.xlu0 %v1288_v31  ;;  %v1291_v32 = vsel %vm128_vm1, %v1287_v30, -inf }
 0x83a   :  { %1292 = vmax.xlane.f32.xlu1 %v1291_v32 }
 0x83c   :  { %v1415_v33 = vpop.f32.mrf.mxu3 }
 0x83d   :  { %v1419_v34 = vmul.f32 0.35355338, %v1415_v33 }
 0x83e   :  { %v1387_v36 = vpop.f32.mrf.mxu0 }
 0x83f   :  { %v1418_v37 = vmul.f32 0.35355338, %v1387_v36  ;;  %v1421_v38 = vadd.f32 %v1419_v34, %v2319_v35 }
 0x841   :  { %v1425_v40 = vsel %vm128_vm1, %v1421_v38, -inf  ;;  %v1420_v42 = vadd.f32 %v1418_v37, %v2315_v27 }
 0x842   :  { %1426 = vmax.xlane.f32.xlu0 %v1425_v40 }
 0x843   :  { %v1422_v43 = vsel %vm128_vm1, %v1420_v42, -inf }
 0x844   :  { %1423 = vmax.xlane.f32.xlu2 %v1422_v43 }
 0x853   :  { %1933 = vrot.lane.b32.xlu1 %v1932_v44, %s2201_s15 }
 0x88b   :  { %v1022_v39 = vpop.xlane.xlu2 %1021 }
 0x88c   :  { %v1026_v45 = vsub.f32 %v1018_v11, %v1022_v39 }
 0x88e   :  { %v1028_v46 = vmul.f32 1.442695, %v1026_v45 }
 0x890   :  { %2011 = vpow2.f32 %v1028_v46 }
 0x896   :  { %v2510_v47 = vpop.eup %2011 }
 0x897   :  { %v1025_v35 = vpop.xlane.xlu0 %1024  ;;  %v1032_v48 = vsel %vm128_vm1, %v2510_v47, 0.0 }
 0x898   :  { %v1027_v27 = vsub.f32 %v1019_v15, %v1025_v35  ;;  %1033 = vadd.xlane.f32.xlu1 %v1032_v48 }
 0x89a   :  { %v1030_v49 = vmul.f32 1.442695, %v1027_v27 }
 0x89c   :  { %2013 = vpow2.f32 %v1030_v49 }
 0x89f   :  { %v1156_v50 = vpop.xlane.xlu1 %1155 }
 0x8a0   :  { %v1160_v53 = vsub.f32 %v1152_v21, %v1156_v50 }
 0x8a2   :  { %v2014_v4 = vpop.eup %2013  ;;  %v1162_v54 = vmul.f32 1.442695, %v1160_v53  ;;  %v1159_v52 = vpop.xlane.xlu2 %1158 }
 0x8a3   :  { %v1161_v55 = vsub.f32 %v1153_v23, %v1159_v52  ;;  %v1035_v56 = vsel %vm128_vm1, %v2014_v4, 0.0 }
 0x8a4   :  { %2015 = vpow2.f32 %v1162_v54  ;;  %1036 = vadd.xlane.f32.xlu2 %v1035_v56 }
 0x8a5   :  { %v1164_v57 = vmul.f32 1.442695, %v1161_v55 }
 0x8a7   :  { %2017 = vpow2.f32 %v1164_v57 }
 0x8aa   :  { %v2515_v58 = vpop.eup %2015 }
 0x8ab   :  { %v1166_v59 = vsel %vm128_vm1, %v2515_v58, 0.0 }
 0x8ac   :  { %1167 = vadd.xlane.f32.xlu0 %v1166_v59  ;;  %v1290_v5 = vpop.xlane.xlu0 %1289 }
 0x8ad   :  { %v2018_v10 = vpop.eup %2017  ;;  %v1293_v60 = vpop.xlane.xlu1 %1292  ;;  %v1294_v0 = vsub.f32 %v1286_v29, %v1290_v5 }
 0x8ae   :  { %v1295_v62 = vsub.f32 %v1287_v30, %v1293_v60  ;;  %v1169_v63 = vsel %vm128_vm1, %v2018_v10, 0.0 }
 0x8af   :  { %1170 = vadd.xlane.f32.xlu2 %v1169_v63  ;;  %v1296_v2 = vmul.f32 1.442695, %v1294_v0  ;;  %v1529_v0 = vld [vmem:[#allocation7 + $0xd8] sm:$0xff] }
 0x8b0   :  { %v1298_v1 = vmul.f32 1.442695, %v1295_v62  ;;  %1550 = vmatpush.msrb.mxu0 %v1529_v0 }
 0x8b1   :  { %1943 = vrot.lane.b32.xlu1 %v1932_v44, %s2202_s16 }
 0x8b2   :  { %2019 = vpow2.f32 %v1298_v1  ;;  %v1528_v1 = vld [vmem:[#allocation7 + $0xd0] sm:$0xff] }
 0x8b3   :  { %2021 = vpow2.f32 %v1296_v2  ;;  %v1527_v2 = vld [vmem:[#allocation7 + $0xc8] sm:$0xff]  ;;  %1551 = vmatpush.msrb.mxu0 %v1528_v1 }
 0x8b5   :  { %v1427_v12 = vpop.xlane.xlu0 %1426  ;;  %1552 = vmatpush.msrb.mxu0 %v1527_v2  ;;  %v1963_v2 = vld [vmem:[#allocation8 + $0xd] ss:$0 sm:$0xff] }
 0x8b6   :  { %v1429_v14 = vsub.f32 %v1421_v38, %v1427_v12 }
 0x8b7   :  { %v1424_v3 = vpop.xlane.xlu2 %1423 }
 0x8b8   :  { %v2521_v6 = vpop.eup %2019  ;;  %v1428_v7 = vsub.f32 %v1420_v42, %v1424_v3  ;;  %v1432_v16 = vmul.f32 1.442695, %v1429_v14  ;;  %v1526_v3 = vld [vmem:[#allocation7 + $0xc0] sm:$0xff] }
 0x8b9   :  { %v1303_v9 = vsel %vm128_vm1, %v2521_v6, 0.0  ;;  %1948 = vrot.lane.b32.xlu1 %v1932_v44, %s2203_s17  ;;  %v2022_v13 = vpop.eup %2021  ;;  %1553 = vmatpush.msrb.mxu0 %v1526_v3 }
 0x8ba   :  { %1304 = vadd.xlane.f32.xlu0 %v1303_v9  ;;  %v1430_v11 = vmul.f32 1.442695, %v1428_v7  ;;  %v1300_v15 = vsel %vm128_vm1, %v2022_v13, 0.0 }
 0x8bc   :  { %2023 = vpow2.f32 %v1430_v11 }
 0x8bd   :  { %2025 = vpow2.f32 %v1432_v16 }
 0x8c2   :  { %1301 = vadd.xlane.f32.xlu0 %v1300_v15  ;;  %v2024_v18 = vpop.eup %2023 }
 0x8c3   :  { %v1434_v22 = vsel %vm128_vm1, %v2024_v18, 0.0  ;;  %v2026_v20 = vpop.eup %2025 }
 0x8c4   :  { %v1437_v23 = vsel %vm128_vm1, %v2026_v20, 0.0 }
 0x8c5   :  { %v1934_v17 = vpop.permute.xlu1 %1933 }
 0x8c6   :  { %v1936_v19 = vunpack.i.h.bf16 %v1934_v17  ;;  %v1935_v21 = vunpack.i.l.bf16 %v1934_v17 }
 0x8c7   :  { %1938 = vrot.lane.b32.xlu2 %v1932_v44, %s2200_s14 }
 0x8c8   :  { %1063 = vmatpush.msrb.mxu1 %v1935_v21  ;;  %1089 = vmatpush.msra.mxu2 %v1936_v19  ;;  %v1961_v21 = vld [vmem:[#allocation8 + $0x9] ss:$0 sm:$0xff] }
 0x8ca   :  { %1435 = vadd.xlane.f32.xlu0 %v1434_v22 }
 0x8d2   :  { %1438 = vadd.xlane.f32.xlu0 %v1437_v23 }
 0x90b   :  { %v1034_v8 = vpop.xlane.xlu1 %1033 }
 0x90c   :  { %2027 = vrcp.f32 %v1034_v8 }
 0x912   :  { %v2028_v24 = vpop.eup %2027 }
 0x913   :  { %v1040_v25 = vmul.f32 %v2028_v24, %v2510_v47 }
 0x915   :  { %1873 = vmatmul.msk.f32.vlgmr.msrb.gmra.mxu1 %vm128_vm1, %v1040_v25 }
 0x917   :  { %v1037_v26 = vpop.xlane.xlu2 %1036 }
 0x918   :  { %2029 = vrcp.f32 %v1037_v26 }
 0x91e   :  { %v2030_v28 = vpop.eup %2029 }
 0x91f   :  { %v1041_v29 = vmul.f32 %v2030_v28, %v2014_v4  ;;  %v1168_v30 = vpop.xlane.xlu0 %1167 }
 0x920   :  { %2031 = vrcp.f32 %v1168_v30 }
 0x921   :  { %1874 = vmatmul.msk.f32.vlgmr.msra.gmra.mxu2 %vm128_vm1, %v1041_v29 }
 0x922   :  { %v1171_v31 = vpop.xlane.xlu2 %1170 }
 0x923   :  { %2033 = vrcp.f32 %v1171_v31  ;;  %v1944_v32 = vpop.permute.xlu1 %1943 }
 0x924   :  { %v1946_v45 = vunpack.i.h.bf16 %v1944_v32  ;;  %v1945_v46 = vunpack.i.l.bf16 %v1944_v32  ;;  %v1622_v32 = vld [vmem:[#allocation7 + $0xf8] sm:$0xff] }
 0x925   :  { %1652 = vmatpush.msrb.mxu3 %v1622_v32 }
 0x926   :  { %v2032_v33 = vpop.eup %2031 }
 0x927   :  { %v1174_v42 = vmul.f32 %v2032_v33, %v2515_v58  ;;  %v1621_v33 = vld [vmem:[#allocation7 + $0xf0] sm:$0xff] }
 0x928   :  { %1653 = vmatpush.msrb.mxu3 %v1621_v33 }
 0x929   :  { %v2034_v34 = vpop.eup %2033 }
 0x92a   :  { %v1939_v36 = vpop.permute.xlu2 %1938  ;;  %v1175_v43 = vmul.f32 %v2034_v34, %v2018_v10  ;;  %v1620_v34 = vld [vmem:[#allocation7 + $0xe8] sm:$0xff] }
 0x92b   :  { %v1941_v37 = vunpack.i.h.bf16 %v1939_v36  ;;  %v1940_v38 = vunpack.i.l.bf16 %v1939_v36  ;;  %v1949_v40 = vpop.permute.xlu1 %1948  ;;  %1654 = vmatpush.msrb.mxu3 %v1620_v34 }
 0x92c   :  { %v1951_v44 = vunpack.i.h.bf16 %v1949_v40  ;;  %v1950_v39 = vunpack.i.l.bf16 %v1949_v40 }
 0x92d   :  { %1197 = vmatpush.msra.mxu1 %v1940_v38  ;;  %1223 = vmatpush.msrb.mxu2 %v1941_v37  ;;  %v1305_v47 = vpop.xlane.xlu0 %1304  ;;  %v1619_v37 = vld [vmem:[#allocation7 + $0xe0] sm:$0xff] }
 0x92e   :  { %2035 = vrcp.f32 %v1305_v47  ;;  %1879 = vmatmul.msk.f32.vlgmr.msra.gmra.mxu1 %vm128_vm1, %v1174_v42  ;;  %1880 = vmatmul.msk.f32.vlgmr.msrb.gmra.mxu2 %vm128_vm1, %v1175_v43  ;;  %v1630_v47 = vld [vmem:[#allocation7 + $0x130] sm:$0xff] }
 0x92f   :  { %1331 = vmatpush.msrb.mxu1 %v1945_v46  ;;  %1357 = vmatpush.msra.mxu2 %v1946_v45  ;;  %v1631_v46 = vld [vmem:[#allocation7 + $0x138] sm:$0xff] }
 0x930   :  { %1655 = vmatpush.msrb.mxu3 %v1619_v37 }
 0x931   :  { %1465 = vmatpush.msra.mxu1 %v1950_v39  ;;  %1491 = vmatpush.msrb.mxu2 %v1951_v44 }
 0x934   :  { %v2036_v35 = vpop.eup %2035 }
 0x935   :  { %v1309_v48 = vmul.f32 %v2036_v35, %v2521_v6  ;;  %v1302_v27 = vpop.xlane.xlu0 %1301 }
 0x936   :  { %2037 = vrcp.f32 %v1302_v27 }
 0x937   :  { %1886 = vmatmul.msk.f32.vlgmr.msra.gmra.mxu2 %vm128_vm1, %v1309_v48 }
 0x93c   :  { %v2038_v49 = vpop.eup %2037 }
 0x93d   :  { %v1308_v50 = vmul.f32 %v2038_v49, %v2022_v13  ;;  %v1436_v53 = vpop.xlane.xlu0 %1435  ;;  %v1629_v49 = vld [vmem:[#allocation7 + $0x128] sm:$0xff] }
 0x93e   :  { %2039 = vrcp.f32 %v1436_v53  ;;  %v1628_v53 = vld [vmem:[#allocation7 + $0x120] sm:$0xff] }
 0x93f   :  { %1885 = vmatmul.msk.f32.vlgmr.msrb.gmra.mxu1 %vm128_vm1, %v1308_v50 }
 0x940   :  { %1680 = vmatpush.msrb.mxu1 %v1631_v46 }
 0x942   :  { %1681 = vmatpush.msrb.mxu1 %v1630_v47 }
 0x944   :  { %v2040_v4 = vpop.eup %2039  ;;  %1682 = vmatpush.msrb.mxu1 %v1629_v49 }
 0x945   :  { %v1442_v54 = vmul.f32 %v2040_v4, %v2024_v18  ;;  %v1439_v52 = vpop.xlane.xlu0 %1438 }
 0x946   :  { %2041 = vrcp.f32 %v1439_v52  ;;  %1683 = vmatpush.msrb.mxu1 %v1628_v53 }
 0x947   :  { %1891 = vmatmul.msk.f32.vlgmr.msra.gmra.mxu1 %vm128_vm1, %v1442_v54 }
 0x94c   :  { %v2042_v55 = vpop.eup %2041 }
 0x94d   :  { %v1443_v56 = vmul.f32 %v2042_v55, %v2026_v20  ;;  %v1627_v55 = vld [vmem:[#allocation7 + $0x118] sm:$0xff] }
 0x94e   :  { %1684 = vmatpush.msrb.mxu1 %v1627_v55 }
 0x94f   :  { %1892 = vmatmul.msk.f32.vlgmr.msrb.gmra.mxu2 %vm128_vm1, %v1443_v56 }
 0x992   :  { %v1065_v57 = vpop.f32.mrf.mxu1 }
 0x9a4   :  { %v1091_v58 = vpop.f32.mrf.mxu2 }
 0x9ab   :  { %v1199_v59 = vpop.f32.mrf.mxu1 }
 0x9ac   :  { %1498 = vrot.lane.b32.xlu2 %v1199_v59, %s2189_s24 }
 0x9b1   :  { %v1225_v10 = vpop.f32.mrf.mxu2 }
 0x9b4   :  { %1500 = vrot.lane.b32.xlu2 %v1225_v10, %s2189_s24 }
 0x9ba   :  { %v1359_v62 = vpop.f32.mrf.mxu2 }
 0x9bc   :  { %v1333_v5 = vpop.f32.mrf.mxu1 }
 0x9bd   :  { %1506 = vrot.lane.b32.xlu0 %v1333_v5, %s2204_s18 }
 0x9c4   :  { %v1467_v60 = vpop.f32.mrf.mxu1 }
 0x9c5   :  { %1514 = vrot.lane.b32.xlu1 %v1467_v60, %s2205_s19  ;;  %v1962_v60 = vld [vmem:[#allocation8 + $0xc] ss:$0 sm:$0xff] }
 0x9cd   :  { %1508 = vrot.lane.b32.xlu1 %v1359_v62, %s2204_s18 }
 0x9d2   :  { %v1493_v63 = vpop.f32.mrf.mxu2 }
 0x9d3   :  { %1516 = vrot.lane.b32.xlu2 %v1493_v63, %s2205_s19 }
 0xa06   :  { %v1499_v6 = vpop.permute.xlu2 %1498 }
 0xa07   :  { %v1520_v9 = vsel %vm128_vm1, %v1065_v57, %v1499_v6 }
 0xa0e   :  { %v1501_v13 = vpop.permute.xlu2 %1500 }
 0xa0f   :  { %v1521_v15 = vsel %vm128_vm1, %v1091_v58, %v1501_v13 }
 0xa2d   :  { %v1517_v17 = vpop.permute.xlu2 %1516 }
 0xa2f   :  { %v1507_v7 = vpop.permute.xlu0 %1506 }
 0xa30   :  { %v1522_v11 = vsel %vm686_vm2, %v1520_v9, %v1507_v7 }
 0xa37   :  { %v1515_v12 = vpop.permute.xlu1 %1514 }
 0xa38   :  { %v1524_v14 = vsel %vm689_vm3, %v1522_v11, %v1515_v12 }
 0xa39   :  { %1893 = vmatmul.msk.f32.vlgmr.msrb.gmra.mxu0 %vm95_vm0, %v1524_v14 }
 0xa3f   :  { %v1509_v16 = vpop.permute.xlu1 %1508 }
 0xa40   :  { %v1523_v18 = vsel %vm686_vm2, %v1521_v15, %v1509_v16 }
 0xa41   :  { %v1525_v19 = vsel %vm689_vm3, %v1523_v18, %v1517_v17  ;;  %v1626_v17 = vld [vmem:[#allocation7 + $0x110] sm:$0xff]  ;;  %v1625_v18 = vld [vmem:[#allocation7 + $0x108] sm:$0xff] }
 0xa42   :  { %1894 = vmatmul.msk.f32.gmra.mxu0 %vm95_vm0, %v1525_v19  ;;  %1685 = vmatpush.msrb.mxu1 %v1626_v17  ;;  %v1624_v19 = vld [vmem:[#allocation7 + $0x100] sm:$0xff] }
 0xa44   :  { %1686 = vmatpush.msrb.mxu1 %v1625_v18  ;;  %v1968_v18 = vld [vmem:[#allocation8 + $0x10] ss:$0 sm:$0xff] }
 0xa46   :  { %1687 = vmatpush.msrb.mxu1 %v1624_v19 }
 0xab6   :  { %v1555_v22 = vpop.f32.mrf.mxu0 }
 0xab7   :  { %v1556_v20 = vadd.f32 %v1961_v21, %v1555_v22 }
 0xab9   :  { %v2556_v23 = vadd.f32 %v1556_v20, %v2433_v41 }
 0xabb   :  { %v1565_v8 = vsel %vm95_vm0, %v2556_v23, 0.0  ;;  %v1573_v24 = vmul.f32 %v2556_v23, %v2556_v23 }
 0xabc   :  { %1566 = vadd.xlane.f32.xlu1 %v1565_v8 }
 0xabd   :  { %v1575_v25 = vsel %vm95_vm0, %v1573_v24, 0.0 }
 0xabe   :  { %1576 = vadd.xlane.f32.xlu0 %v1575_v25 }
 0xabf   :  { %v1558_v26 = vpop.f32.mrf.mxu0 }
 0xac0   :  { %v1559_v28 = vadd.f32 %v1961_v21, %v1558_v26  ;;  %v1964_v21 = vld [vmem:[#allocation8 + $0xa] ss:$0 sm:$0xff]  ;;  %v1965_v26 = vld [vmem:[#allocation8 + $0xb] ss:$0 sm:$0xff] }
 0xac2   :  { %v2564_v29 = vadd.f32 %v1559_v28, %v2437_v51 }
 0xac4   :  { %v1568_v30 = vsel %vm95_vm0, %v2564_v29, 0.0  ;;  %v1574_v41 = vmul.f32 %v2564_v29, %v2564_v29 }
 0xac5   :  { %1569 = vadd.xlane.f32.xlu2 %v1568_v30 }
 0xac6   :  { %v1578_v31 = vsel %vm95_vm0, %v1574_v41, 0.0 }
 0xac7   :  { %1579 = vadd.xlane.f32.xlu1 %v1578_v31 }
 0xb2f   :  { %v1567_v36 = vpop.xlane.xlu1 %1566 }
 0xb30   :  { %v1571_v51 = vmul.f32 %v1567_v36, %v2413_v61 }
 0xb31   :  { %v1577_v38 = vpop.xlane.xlu0 %1576 }
 0xb32   :  { %v1583_v40 = vmul.f32 %v1571_v51, %v1571_v51  ;;  %v1581_v42 = vmul.f32 %v1577_v38, %v2413_v61  ;;  %v1587_v5 = vsub.f32 %v2556_v23, %v1571_v51 }
 0xb34   :  { %v1585_v43 = vsub.f32 %v1581_v42, %v1583_v40  ;;  %v1756_v40 = vld [vmem:[#allocation7 + $0x158] sm:$0xff]  ;;  %v1755_v42 = vld [vmem:[#allocation7 + $0x150] sm:$0xff] }
 0xb35   :  { %1777 = vmatpush.msra.mxu2 %v1756_v40 }
 0xb36   :  { %v1589_v44 = vadd.f32 1e-05, %v1585_v43  ;;  %v1754_v43 = vld [vmem:[#allocation7 + $0x148] sm:$0xff] }
 0xb37   :  { %1778 = vmatpush.msra.mxu2 %v1755_v42 }
 0xb38   :  { %2043 = vrsqrt.f32 %v1589_v44  ;;  %v1570_v39 = vpop.xlane.xlu2 %1569  ;;  %vm1597_vm2 = vweird.f32 %v1589_v44 }
 0xb39   :  { %v1572_v45 = vmul.f32 %v1570_v39, %v2413_v61  ;;  %1779 = vmatpush.msra.mxu2 %v1754_v43  ;;  %v1753_v39 = vld [vmem:[#allocation7 + $0x140] sm:$0xff] }
 0xb3a   :  { %v1580_v35 = vpop.xlane.xlu1 %1579 }
 0xb3b   :  { %v1584_v48 = vmul.f32 %v1572_v45, %v1572_v45  ;;  %v1582_v27 = vmul.f32 %v1580_v35, %v2413_v61  ;;  %v1588_v12 = vsub.f32 %v2564_v29, %v1572_v45  ;;  %1780 = vmatpush.msra.mxu2 %v1753_v39 }
 0xb3d   :  { %v1586_v50 = vsub.f32 %v1582_v27, %v1584_v48 }
 0xb3e   :  { %v2044_v4 = vpop.eup %2043 }
 0xb3f   :  { %v1592_v54 = vmul.f32 %v2044_v4, %v1589_v44  ;;  %v1590_v52 = vadd.f32 1e-05, %v1586_v50  ;;  %vm1598_vm1 = vweird.f32 %v2044_v4 }
 0xb40   :  { %vm1599_vm3 = vmor %vm1597_vm2, %vm1598_vm1 }
 0xb41   :  { %v1593_v56 = vmul.f32 %v2044_v4, %v1592_v54  ;;  %2045 = vrsqrt.f32 %v1590_v52  ;;  %vm1607_vm7 = vweird.f32 %v1590_v52 }
 0xb43   :  { %v1594_v57 = vmul.f32 0.5, %v1593_v56 }
 0xb45   :  { %v1595_v58 = vsub.f32 1.5, %v1594_v57 }
 0xb47   :  { %v2046_v59 = vpop.eup %2045  ;;  %v1596_v10 = vmul.f32 %v2044_v4, %v1595_v58 }
 0xb48   :  { %v1602_v62 = vmul.f32 %v2046_v59, %v1590_v52  ;;  %vm1608_vm6 = vweird.f32 %v2046_v59 }
 0xb49   :  { %v1600_v63 = vsel %vm1599_vm3, %v2044_v4, %v1596_v10  ;;  %vm1609_vm8 = vmor %vm1607_vm7, %vm1608_vm6 }
 0xb4a   :  { %v1611_v0 = vmul.f32 %v1600_v63, %v1587_v5  ;;  %v1603_v1 = vmul.f32 %v2046_v59, %v1602_v62  ;;  %v1966_v63 = vld [vmem:[#allocation8 + $0xe] ss:$0 sm:$0xff] }
 0xb4c   :  { %v1614_v3 = vmul.f32 %v1962_v60, %v1611_v0  ;;  %v1604_v6 = vmul.f32 0.5, %v1603_v1 }
 0xb4e   :  { %v1605_v7 = vsub.f32 1.5, %v1604_v6  ;;  %v1617_v9 = vadd.f32 %v1963_v2, %v1614_v3 }
 0xb50   :  { %v1606_v11 = vmul.f32 %v2046_v59, %v1605_v7  ;;  %1895 = vmatmul.msk.f32.vlgmr.msrb.gmra.mxu3 %vm95_vm0, %v1617_v9 }
 0xb52   :  { %v1610_v13 = vsel %vm1609_vm8, %v2046_v59, %v1606_v11 }
 0xb53   :  { %v1612_v14 = vmul.f32 %v1610_v13, %v1588_v12 }
 0xb55   :  { %v1615_v15 = vmul.f32 %v1962_v60, %v1612_v14 }
 0xb57   :  { %v1618_v16 = vadd.f32 %v1963_v2, %v1615_v15 }
 0xb59   :  { %1896 = vmatmul.msk.f32.gmra.mxu3 %vm95_vm0, %v1618_v16 }
 0xbd3   :  { %v1657_v22 = vpop.f32.mrf.mxu3 }
 0xbd4   :  { %v1658_v20 = vadd.f32 %v1964_v21, %v1657_v22 }
 0xbd6   :  { %v1663_v23 = vmax.f32 %v1658_v20, 0.0 }
 0xbd8   :  { %1897 = vmatmul.msk.f32.vlgmr.msrb.gmra.mxu1 %vm839_vm11, %v1663_v23 }
 0xbdc   :  { %v1660_v8 = vpop.f32.mrf.mxu3 }
 0xbdd   :  { %v1661_v24 = vadd.f32 %v1964_v21, %v1660_v8 }
 0xbdf   :  { %v1664_v25 = vmax.f32 %v1661_v24, 0.0 }
 0xbe1   :  { %1898 = vmatmul.msk.f32.gmra.mxu1 %vm839_vm11, %v1664_v25 }
 0xc55   :  { %v1689_v28 = vpop.f32.mrf.mxu1 }
 0xc56   :  { %v1690_v29 = vadd.f32 %v1965_v26, %v1689_v28 }
 0xc58   :  { %v1697_v30 = vadd.f32 %v1690_v29, %v1617_v9 }
 0xc5a   :  { %v1699_v41 = vsel %vm95_vm0, %v1697_v30, 0.0  ;;  %v1707_v31 = vmul.f32 %v1697_v30, %v1697_v30 }
 0xc5b   :  { %1700 = vadd.xlane.f32.xlu0 %v1699_v41 }
 0xc5c   :  { %v1709_v32 = vsel %vm95_vm0, %v1707_v31, 0.0 }
 0xc5d   :  { %1710 = vadd.xlane.f32.xlu2 %v1709_v32 }
 0xc5e   :  { %v1692_v33 = vpop.f32.mrf.mxu1 }
 0xc5f   :  { %v1693_v34 = vadd.f32 %v1965_v26, %v1692_v33 }
 0xc61   :  { %v1698_v36 = vadd.f32 %v1693_v34, %v1618_v16 }
 0xc63   :  { %v1702_v37 = vsel %vm95_vm0, %v1698_v36, 0.0  ;;  %v1708_v51 = vmul.f32 %v1698_v36, %v1698_v36 }
 0xc64   :  { %1703 = vadd.xlane.f32.xlu1 %v1702_v37 }
 0xc65   :  { %v1712_v38 = vsel %vm95_vm0, %v1708_v51, 0.0 }
 0xc66   :  { %1713 = vadd.xlane.f32.xlu0 %v1712_v38 }
 0xcce   :  { %v1701_v44 = vpop.xlane.xlu0 %1700 }
 0xccf   :  { %v1705_v45 = vmul.f32 %v1701_v44, %v2413_v61 }
 0xcd0   :  { %v1711_v46 = vpop.xlane.xlu2 %1710 }
 0xcd1   :  { %v1717_v47 = vmul.f32 %v1705_v45, %v1705_v45  ;;  %v1715_v35 = vmul.f32 %v1711_v46, %v2413_v61  ;;  %v1721_v62 = vsub.f32 %v1697_v30, %v1705_v45 }
 0xcd3   :  { %v1719_v48 = vsub.f32 %v1715_v35, %v1717_v47 }
 0xcd5   :  { %v1723_v27 = vadd.f32 1e-05, %v1719_v48 }
 0xcd7   :  { %2047 = vrsqrt.f32 %v1723_v27  ;;  %v1704_v49 = vpop.xlane.xlu1 %1703  ;;  %vm1731_vm10 = vweird.f32 %v1723_v27 }
 0xcd8   :  { %v1706_v50 = vmul.f32 %v1704_v49, %v2413_v61 }
 0xcd9   :  { %v1714_v53 = vpop.xlane.xlu0 %1713 }
 0xcda   :  { %v1718_v4 = vmul.f32 %v1706_v50, %v1706_v50  ;;  %v1716_v54 = vmul.f32 %v1714_v53, %v2413_v61  ;;  %v1967_v61 = vld [vmem:[#allocation8 + $0xf] ss:$0 sm:$0xff]  ;;  %v1722_v13 = vsub.f32 %v1698_v36, %v1706_v50 }
 0xcdc   :  { %v1720_v52 = vsub.f32 %v1716_v54, %v1718_v4 }
 0xcdd   :  { %v2048_v55 = vpop.eup %2047 }
 0xcde   :  { %v1726_v56 = vmul.f32 %v2048_v55, %v1723_v27  ;;  %v1724_v57 = vadd.f32 1e-05, %v1720_v52  ;;  %vm1732_vm9 = vweird.f32 %v2048_v55 }
 0xcdf   :  { %vm1733_vm11 = vmor %vm1731_vm10, %vm1732_vm9 }
 0xce0   :  { %v1727_v58 = vmul.f32 %v2048_v55, %v1726_v56  ;;  %2049 = vrsqrt.f32 %v1724_v57  ;;  %vm1741_vm13 = vweird.f32 %v1724_v57 }
 0xce2   :  { %v1728_v59 = vmul.f32 0.5, %v1727_v58 }
 0xce4   :  { %v1729_v10 = vsub.f32 1.5, %v1728_v59 }
 0xce6   :  { %v2050_v5 = vpop.eup %2049  ;;  %v1730_v60 = vmul.f32 %v2048_v55, %v1729_v10 }
 0xce7   :  { %v1736_v0 = vmul.f32 %v2050_v5, %v1724_v57  ;;  %vm1742_vm12 = vweird.f32 %v2050_v5 }
 0xce8   :  { %v1734_v1 = vsel %vm1733_vm11, %v2048_v55, %v1730_v60  ;;  %vm1743_vm14 = vmor %vm1741_vm13, %vm1742_vm12 }
 0xce9   :  { %v1745_v2 = vmul.f32 %v1734_v1, %v1721_v62  ;;  %v1737_v3 = vmul.f32 %v2050_v5, %v1736_v0 }
 0xceb   :  { %v1748_v6 = vmul.f32 %v1966_v63, %v1745_v2  ;;  %v1738_v7 = vmul.f32 0.5, %v1737_v3 }
 0xced   :  { %v1739_v9 = vsub.f32 1.5, %v1738_v7  ;;  %v1751_v11 = vadd.f32 %v1967_v61, %v1748_v6 }
 0xcef   :  { %v1740_v12 = vmul.f32 %v2050_v5, %v1739_v9  ;;  %1899 = vmatmul.msk.f32.vlgmr.msra.gmra.mxu2 %vm95_vm0, %v1751_v11 }
 0xcf1   :  { %v1744_v14 = vsel %vm1743_vm14, %v2050_v5, %v1740_v12 }
 0xcf2   :  { %v1746_v15 = vmul.f32 %v1744_v14, %v1722_v13 }
 0xcf4   :  { %v1749_v16 = vmul.f32 %v1966_v63, %v1746_v15 }
 0xcf6   :  { %v1752_v17 = vadd.f32 %v1967_v61, %v1749_v16 }
 0xcf8   :  { %1900 = vmatmul.msk.f32.gmra.mxu2 %vm95_vm0, %v1752_v17 }
 0xd72   :  { %v1782_v19 = vpop.f32.mrf.mxu2 }
 0xd73   :  { %v1783_v21 = vadd.f32 %v1968_v18, %v1782_v19 }
 0xd75   :  { %1788 = vmax.xlane.f32.xlu2 %v1783_v21 }
 0xd7b   :  { %v1785_v22 = vpop.f32.mrf.mxu2 }
 0xd7c   :  { %v1786_v20 = vadd.f32 %v1968_v18, %v1785_v22 }
 0xd7e   :  { %1790 = vmax.xlane.f32.xlu1 %v1786_v20 }
 0xde8   :  { %v1789_v23 = vpop.xlane.xlu2 %1788 }
 0xde9   :  { %v1792_v8 = vsub.f32 %v1783_v21, %v1789_v23 }
 0xdeb   :  { %v1794_v24 = vmul.f32 1.442695, %v1792_v8 }
 0xded   :  { %2051 = vpow2.f32 %v1794_v24 }
 0xdf1   :  { %v1791_v25 = vpop.xlane.xlu1 %1790 }
 0xdf2   :  { %v1793_v26 = vsub.f32 %v1786_v20, %v1791_v25 }
 0xdf3   :  { %v2052_v28 = vpop.eup %2051 }
 0xdf4   :  { %v1796_v29 = vmul.f32 1.442695, %v1793_v26  ;;  %1798 = vadd.xlane.f32.xlu0 %v2052_v28 }
 0xdf6   :  { %2053 = vpow2.f32 %v1796_v29 }
 0xdfc   :  { %v2054_v30 = vpop.eup %2053 }
 0xdfd   :  { %1800 = vadd.xlane.f32.xlu2 %v2054_v30 }
 0xe67   :  { %v1799_v41 = vpop.xlane.xlu0 %1798 }
 0xe68   :  { %2055 = vlog2.f32 %v1799_v41 }
 0xe6e   :  { %v2056_v31 = vpop.eup %2055 }
 0xe6f   :  { %v1803_v32 = vmul.f32 0.6931472, %v2056_v31 }
 0xe70   :  { %v1801_v33 = vpop.xlane.xlu2 %1800 }
 0xe71   :  { %v1806_v34 = vadd.f32 %v1803_v32, %v1789_v23  ;;  %2057 = vlog2.f32 %v1801_v33 }
 0xe73   :  { %v1808_v36 = vsub.f32 %v1783_v21, %v1806_v34 }
 0xe75   :  { %1810 = vst [vmem:[#allocation10] sm:$0xff] %v1808_v36 }
 0xe77   :  { %v2058_v37 = vpop.eup %2057 }
 0xe78   :  { %v1805_v51 = vmul.f32 0.6931472, %v2058_v37 }
 0xe7a   :  { %v1807_v38 = vadd.f32 %v1805_v51, %v1791_v25 }
 0xe7c   :  { %v1809_v40 = vsub.f32 %v1786_v20, %v1807_v38 }
 0xe7e   :  { %1811 = vst [vmem:[#allocation10 + $0x8] sm:$0xff] %v1809_v40 }
 0xe7f   :  { %1824 = dma.vmem_to_hbm [thread:$0]  %s1817_s21, 256, %s1819_s26, [#allocation4], %s2188_s23, %s2188_s23, %s2189_s24  }
 0xe80   :  { %2185 = dma.done.wait [#allocation4], 256  }
 0xe81   :  { %2186 = vsyncadd [#allocation4], 4294967040 }
 0xe82   :  { %1829 = vsyncpa [#allocation3], 1 }
 0xe83   :  { %1830 = vsyncpa [#allocation6], 1 }
 0xe84   :  { %1831 = vsyncpa [#allocation9], 1 }
 0xe85   :  { %1832 = vsyncpa [#allocation4], 1 }

</bundles_post_ra>
